<compile_context>
chip_gen: v7x
topology: tpu7x:2x2x1
jax: 0.10.0
libtpu: 0.0.40
codegen_flags: <defaults>
</compile_context>

<pallas_src>
import jax
import jax.numpy as jnp
from jax.experimental import pallas as pl
from jax.experimental.pallas import tpu as pltpu

EPS = 1e-12


def layernorm_kernel(x_ref, w_ref, b_ref, o_ref):
    # x_ref: (TILE_ROWS, D)   w_ref/b_ref: (1, D)
    x = x_ref[...].astype(jnp.float32)
    w = w_ref[...].astype(jnp.float32)
    b = b_ref[...].astype(jnp.float32)
    inv_d = jnp.float32(1.0 / x.shape[-1])
    # Issue both cross-lane reductions back-to-back (shortens the dependence chain
    # for the latency-bound single-block path; neutral when HBM-bound).
    s1 = jnp.sum(x, axis=-1, keepdims=True)
    s2 = jnp.sum(x * x, axis=-1, keepdims=True)
    mean = s1 * inv_d
    # Clamp tiny negative values from cancellation (e.g. near-constant rows).
    var = jnp.maximum(s2 * inv_d - mean * mean, 0.0)
    inv = jax.lax.rsqrt(var + EPS)                      # EUP rsqrt
    # Fold the affine scale into the normalizer; centered output path kept.
    o_ref[...] = ((x - mean) * (inv * w) + b).astype(o_ref.dtype)


def _round_up(n, m):
    return ((n + m - 1) // m) * m


def _sublane_multiple(dtype):
    itemsize = jnp.dtype(dtype).itemsize
    return max(8, 32 // itemsize)      # 8 for f32, 16 for bf16, 32 for int8/fp8


def layernorm(x, weight, bias, *, tile_rows=2048):
    """x: (B, S, D); weight/bias: (D,). Matches nn.LayerNorm((D,), eps=1e-12)."""
    B, S, D = x.shape
    rows = B * S
    x2 = x.reshape(rows, D)
    w2 = weight.reshape(1, D)
    b2 = bias.reshape(1, D)

    sub = _sublane_multiple(x.dtype)

    # Number of row tiles: big tiles amortize per-step pipeline cost; an even tile
    # count keeps the "parallel" grid axis balanced across v7x's 2 TensorCores.
    n_tiles = max(1, pl.cdiv(rows, tile_rows))
    if n_tiles > 1 or rows >= 1024:
        n_tiles = _round_up(n_tiles, 2)

    if n_tiles == 1:
        tile = rows                    # full-extent block: no divisibility constraint
    else:
        tile = _round_up(pl.cdiv(rows, n_tiles), sub)
    grid = pl.cdiv(rows, tile)         # ragged last block handled by Pallas (no pad/slice)

    # Declared VMEM: double-buffered in+out tiles (+ weight/bias + slack), capped
    # below the chip's physical VMEM (v7x only has 64 MiB per TensorCore).
    itemsize = jnp.dtype(x.dtype).itemsize
    io_bytes = 2 * tile * D * itemsize                 # one input tile + one output tile
    try:
        vmem_cap = int(0.75 * pltpu.get_tpu_info().vmem_capacity_bytes)
    except Exception:
        vmem_cap = 48 << 20
    vmem_limit = min(max(2 * io_bytes + (4 << 20), 8 << 20), vmem_cap)

    out = pl.pallas_call(
        layernorm_kernel,
        out_shape=jax.ShapeDtypeStruct((rows, D), x.dtype),
        grid_spec=pltpu.PrefetchScalarGridSpec(
            num_scalar_prefetch=0,
            grid=(grid,),
            in_specs=[
                pl.BlockSpec((tile, D), lambda i: (i, 0)),
                pl.BlockSpec((1, D), lambda i: (0, 0)),
                pl.BlockSpec((1, D), lambda i: (0, 0)),
            ],
            out_specs=pl.BlockSpec((tile, D), lambda i: (i, 0)),
        ),
        compiler_params=pltpu.CompilerParams(
            dimension_semantics=("parallel",),   # row tiles shard across v7x's 2 TCs
            vmem_limit_bytes=int(vmem_limit),
        ),
    )(x2, w2, b2)

    return out.reshape(B, S, D)


def _reference(x, weight, bias):
    xf = x.astype(jnp.float32)
    mean = jnp.mean(xf, axis=-1, keepdims=True)
    var = jnp.mean((xf - mean) ** 2, axis=-1, keepdims=True)
    return (xf - mean) * jax.lax.rsqrt(var + EPS) * weight + bias


if __name__ == "__main__":
    key = jax.random.PRNGKey(0)
    kx, kw, kb, kx2, kx3 = jax.random.split(key, 5)

    D = 256  # normalized dim fixed by the module
    weight = 1.0 + 0.01 * jax.random.normal(kw, (D,), dtype=jnp.float32)
    bias = 0.01 * jax.random.normal(kb, (D,), dtype=jnp.float32)

    # 1) Shape from the PyTorch module spec: (1, 384, 256) f32 -> single-block path.
    x = jax.random.normal(kx, (1, 384, D), dtype=jnp.float32)
    y = layernorm(x, weight, bias)
    jax.block_until_ready(y)
    assert jnp.max(jnp.abs(y - _reference(x, weight, bias))) < 1e-5, "mismatch (small f32)"

    # 2) Non-divisible row count -> ragged multi-tile path (3000 rows, grid=2, tile=1504).
    x_big = jax.random.normal(kx2, (3, 1000, D), dtype=jnp.float32)
    y_big = layernorm(x_big, weight, bias)
    jax.block_until_ready(y_big)
    assert jnp.max(jnp.abs(y_big - _reference(x_big, weight, bias))) < 1e-5, "mismatch (tiled f32)"

    # 3) bf16 input stays bf16 in HBM (halves bandwidth); f32 math inside the kernel.
    x_bf = jax.random.normal(kx3, (2, 640, D), dtype=jnp.float32).astype(jnp.bfloat16)
    y_bf = layernorm(x_bf, weight, bias)
    jax.block_until_ready(y_bf)
    err = jnp.max(jnp.abs(y_bf.astype(jnp.float32) - _reference(x_bf, weight, bias)))
    assert err < 5e-2, "mismatch (bf16)"

    print("KERNEL_OK")
</pallas_src>

<mosaic_0001>
module attributes {stable_mosaic.version = 11 : i64} {
  func.func @layernorm_kernel(%arg0: i32, %arg1: memref<384x256xf32, #tpu.memory_space<vmem>>, %arg2: memref<1x256xf32, #tpu.memory_space<vmem>>, %arg3: memref<1x256xf32, #tpu.memory_space<vmem>>, %arg4: memref<384x256xf32, #tpu.memory_space<vmem>>) attributes {dimension_semantics = [#tpu.dimension_semantics<parallel>], iteration_bounds = array<i64: 1>, scalar_prefetch = 0 : i64, scratch_operands = 0 : i64, tpu.core_type = #tpu.core_type<tc>, window_params = [{transform_indices = @transform_0, window_bounds = array<i64: 384, 256>}, {pipeline_mode = #tpu.pipeline_mode<synchronous>, transform_indices = @transform_1, window_bounds = array<i64: 1, 256>}, {pipeline_mode = #tpu.pipeline_mode<synchronous>, transform_indices = @transform_2, window_bounds = array<i64: 1, 256>}, {transform_indices = @transform_3, window_bounds = array<i64: 384, 256>}]} {
    %c0 = arith.constant 0 : index
    %c0_0 = arith.constant 0 : index
    %0 = vector.load %arg1[%c0, %c0_0] : memref<384x256xf32, #tpu.memory_space<vmem>>, vector<384x256xf32>
    %c0_1 = arith.constant 0 : index
    %c0_2 = arith.constant 0 : index
    %1 = vector.load %arg2[%c0_1, %c0_2] : memref<1x256xf32, #tpu.memory_space<vmem>>, vector<1x256xf32>
    %c0_3 = arith.constant 0 : index
    %c0_4 = arith.constant 0 : index
    %2 = vector.load %arg3[%c0_3, %c0_4] : memref<1x256xf32, #tpu.memory_space<vmem>>, vector<1x256xf32>
    %cst = arith.constant dense<0.000000e+00> : vector<384xf32>
    %3 = vector.multi_reduction <add>, %0, %cst [1] : vector<384x256xf32> to vector<384xf32>
    %4 = vector.shape_cast %3 : vector<384xf32> to vector<384x1xf32>
    %5 = arith.mulf %0, %0 : vector<384x256xf32>
    %cst_5 = arith.constant dense<0.000000e+00> : vector<384xf32>
    %6 = vector.multi_reduction <add>, %5, %cst_5 [1] : vector<384x256xf32> to vector<384xf32>
    %7 = vector.shape_cast %6 : vector<384xf32> to vector<384x1xf32>
    %cst_6 = arith.constant 3.906250e-03 : f32
    %8 = vector.broadcast %cst_6 : f32 to vector<384x1xf32>
    %9 = arith.mulf %4, %8 : vector<384x1xf32>
    %cst_7 = arith.constant 3.906250e-03 : f32
    %10 = vector.broadcast %cst_7 : f32 to vector<384x1xf32>
    %11 = arith.mulf %7, %10 : vector<384x1xf32>
    %12 = arith.mulf %9, %9 : vector<384x1xf32>
    %13 = arith.subf %11, %12 : vector<384x1xf32>
    %cst_8 = arith.constant 0.000000e+00 : f32
    %14 = vector.broadcast %cst_8 : f32 to vector<384x1xf32>
    %15 = arith.maximumf %13, %14 : vector<384x1xf32>
    %cst_9 = arith.constant 9.99999996E-13 : f32
    %16 = vector.broadcast %cst_9 : f32 to vector<384x1xf32>
    %17 = arith.addf %15, %16 : vector<384x1xf32>
    %18 = math.rsqrt %17 : vector<384x1xf32>
    %19 = vector.broadcast %9 : vector<384x1xf32> to vector<384x256xf32>
    %20 = arith.subf %0, %19 : vector<384x256xf32>
    %21 = vector.broadcast %18 : vector<384x1xf32> to vector<384x256xf32>
    %22 = vector.broadcast %1 : vector<1x256xf32> to vector<384x256xf32>
    %23 = arith.mulf %21, %22 : vector<384x256xf32>
    %24 = arith.mulf %20, %23 : vector<384x256xf32>
    %25 = vector.broadcast %2 : vector<1x256xf32> to vector<384x256xf32>
    %26 = arith.addf %24, %25 : vector<384x256xf32>
    %c0_10 = arith.constant 0 : index
    %c0_11 = arith.constant 0 : index
    %27 = vector.load %arg4[%c0_10, %c0_11] : memref<384x256xf32, #tpu.memory_space<vmem>>, vector<384x256xf32>
    tpu.vector_store %arg4[%c0_10, %c0_11], %26 {strides = array<i32>} : memref<384x256xf32, #tpu.memory_space<vmem>>, vector<384x256xf32>,
    return
  }
  func.func @transform_0(%arg0: i32) -> (i32, i32) {
    %c0_i32 = arith.constant 0 : i32
    %c0_i32_0 = arith.constant 0 : i32
    return %arg0, %c0_i32 : i32, i32
  }
  func.func @transform_1(%arg0: i32) -> (i32, i32) {
    %c0_i32 = arith.constant 0 : i32
    %c0_i32_0 = arith.constant 0 : i32
    %c0_i32_1 = arith.constant 0 : i32
    return %c0_i32, %c0_i32_0 : i32, i32
  }
  func.func @transform_2(%arg0: i32) -> (i32, i32) {
    %c0_i32 = arith.constant 0 : i32
    %c0_i32_0 = arith.constant 0 : i32
    %c0_i32_1 = arith.constant 0 : i32
    return %c0_i32, %c0_i32_0 : i32, i32
  }
  func.func @transform_3(%arg0: i32) -> (i32, i32) {
    %c0_i32 = arith.constant 0 : i32
    %c0_i32_0 = arith.constant 0 : i32
    return %arg0, %c0_i32 : i32, i32
  }
}

</mosaic_0001>

<bundles_post_ra>
// kernel: tpu_custom_call.1
= control target key start
LH: loop header
LB: loop body
LE: loop exit
PB: predicated region body
PF: predicated region fallthrough
CT: control target
= control target key end

     0   :  { %8 = vsyncpa [#allocation3], 0  ;;  %s3256_s0 = inlined_call_operand.hbm [shape: f32[384,256], index: 0, kind: input, shape index: {}]   ;;  %s3257_s1 = inlined_call_operand.vmem [shape: f32[1,256], index: 1, kind: input, shape index: {}]   ;;  %s3258_s2 = inlined_call_operand.vmem [shape: f32[1,256], index: 2, kind: input, shape index: {}]   ;;  %s3259_s3 = inlined_call_operand.hbm [shape: f32[384,256], index: 3, kind: output, shape index: {}]  }
   0x1   :  { %9 = vsyncpa [#allocation4], 0  ;;  %s1523_s12 = smov [#allocation2]   ;;  %s1475_s16 = scalar_lea.hbm %s3256_s0, 12288 }
   0x2   :  { %s15_s13 = sshll.u32 %s1523_s12, 4  ;;  %p1476_p0 = scmp.ne.s32.totalorder %s3256_s0, %s1475_s16  ;;  %s16_s13 = int_to_ptr.vmem [resolvable:$true] %s15_s13 }
   0x3   :  { %p1479_p1 = scmp.lt.u32.totalorder %s1475_s16, %s3256_s0 }
   0x5   :  { %p1481_p2 = pnand %p1479_p1, %p1476_p0 }
   0x7   :  { %1484 = shalt.err (!%p1481_p2)
}
   0x8   :  { %s1485_s21 = scalar_lea.vmem %s16_s13, 12288  ;;  %p1490_p4 = scmp.lt.s32.totalorder %s16_s13, %s16_s13 }
   0x9   :  { %p1486_p3 = scmp.ne.s32.totalorder %s16_s13, %s1485_s21  ;;  %p1491_p5 = scmp.lt.s32.totalorder %s1485_s21, %s1485_s21 }
   0xb   :  { %p1492_p6 = por %p1491_p5, %p1490_p4 }
   0xd   :  { %p1493_p7 = pnand %p1492_p6, %p1486_p3 }
   0xf   :  { %1496 = shalt.err (!%p1493_p7)
}
  0x10   :  { %s1524_s22 = smov 256   ;;  %s1525_s23 = smov 16  }
  0x11   :  { %21 = dma.hbm_to_vmem [thread:$0]  %s3256_s0, 12288, %s16_s13, [#allocation3], %s1524_s22, %s1524_s22, %s1525_s23  }
  0x12   :  { %1519 = dma.done.wait [#allocation3], 12288  }
  0x13   :  { %1520 = vsyncadd [#allocation3], 4294955008  ;;  %v1562_v0 = vld [vmem:[#allocation2 + $0x20] sm:$0xff]  ;;  %v1564_v1 = vld [vmem:[#allocation2 + $0x28] sm:$0xff] }
  0x14   :  { %3489 = vst [vmem:[#allocation8_spill] sm:$0xff] %v1562_v0  ;;  %3490 = vst [vmem:[#allocation9_spill] sm:$0xff] %v1564_v1  ;;  %v1566_v2 = vld [vmem:[#allocation2] sm:$0xff]  ;;  %v133_v3 = vadd.f32 %v1564_v1, %v1562_v0  ;;  %v1570_v4 = vld [vmem:[#allocation2 + $0x8] sm:$0xff] }
  0x15   :  { %3491 = vst [vmem:[#allocation10_spill] sm:$0xff] %v1566_v2  ;;  %v1572_v5 = vld [vmem:[#allocation2 + $0x30] sm:$0xff]  ;;  %v1574_v6 = vld [vmem:[#allocation2 + $0x38] sm:$0xff]  ;;  %v127_v7 = vadd.f32 %v1570_v4, %v1566_v2  ;;  %v1590_v14 = vld [vmem:[#allocation2 + $0x40] sm:$0xff] }
  0x16   :  { %3492 = vst [vmem:[#allocation11_spill] sm:$0xff] %v1574_v6  ;;  %v1578_v8 = vld [vmem:[#allocation2 + $0x10] sm:$0xff]  ;;  %v1580_v9 = vld [vmem:[#allocation2 + $0x18] sm:$0xff]  ;;  %134 = vadd.xlane.f32.xlu1 %v133_v3  ;;  %v136_v10 = vadd.f32 %v1574_v6, %v1572_v5  ;;  %v1592_v15 = vld [vmem:[#allocation2 + $0x48] sm:$0xff] }
  0x17   :  { %3493 = vst [vmem:[#allocation12_spill] sm:$0xff] %v1578_v8  ;;  %3494 = vst [vmem:[#allocation13_spill] sm:$0xff] %v1580_v9  ;;  %128 = vadd.xlane.f32.xlu0 %v127_v7  ;;  %v130_v11 = vadd.f32 %v1580_v9, %v1578_v8  ;;  %v1586_v12 = vld [vmem:[#allocation2 + $0x50] sm:$0xff]  ;;  %v1588_v13 = vld [vmem:[#allocation2 + $0x58] sm:$0xff]  ;;  %v139_v17 = vadd.f32 %v1592_v15, %v1590_v14 }
  0x18   :  { %3495 = vst [vmem:[#allocation14_spill] sm:$0xff] %v1586_v12  ;;  %3496 = vst [vmem:[#allocation15_spill] sm:$0xff] %v1588_v13  ;;  %v142_v16 = vadd.f32 %v1588_v13, %v1586_v12  ;;  %v1598_v18 = vld [vmem:[#allocation2 + $0x70] sm:$0xff]  ;;  %v1600_v19 = vld [vmem:[#allocation2 + $0x78] sm:$0xff] }
  0x19   :  { %3497 = vst [vmem:[#allocation16_spill] sm:$0xff] %v1592_v15  ;;  %3498 = vst [vmem:[#allocation17_spill] sm:$0xff] %v1600_v19  ;;  %v1602_v20 = vld [vmem:[#allocation2 + $0x60] sm:$0xff]  ;;  %v1604_v21 = vld [vmem:[#allocation2 + $0x68] sm:$0xff]  ;;  %v148_v22 = vadd.f32 %v1600_v19, %v1598_v18 }
  0x1a   :  { %137 = vadd.xlane.f32.xlu1 %v136_v10  ;;  %3499 = vst [vmem:[#allocation18_spill] sm:$0xff] %v1602_v20  ;;  %3500 = vst [vmem:[#allocation19_spill] sm:$0xff] %v1604_v21  ;;  %v145_v23 = vadd.f32 %v1604_v21, %v1602_v20  ;;  %v1610_v24 = vld [vmem:[#allocation2 + $0x90] sm:$0xff]  ;;  %v1612_v25 = vld [vmem:[#allocation2 + $0x98] sm:$0xff] }
  0x1b   :  { %131 = vadd.xlane.f32.xlu0 %v130_v11  ;;  %3501 = vst [vmem:[#allocation20_spill] sm:$0xff] %v1610_v24  ;;  %3502 = vst [vmem:[#allocation21_spill] sm:$0xff] %v1612_v25  ;;  %v1614_v26 = vld [vmem:[#allocation2 + $0x80] sm:$0xff]  ;;  %v1616_v27 = vld [vmem:[#allocation2 + $0x88] sm:$0xff]  ;;  %v154_v28 = vadd.f32 %v1612_v25, %v1610_v24 }
  0x1c   :  { %3503 = vst [vmem:[#allocation22_spill] sm:$0xff] %v1614_v26  ;;  %3504 = vst [vmem:[#allocation23_spill] sm:$0xff] %v1616_v27  ;;  %v151_v29 = vadd.f32 %v1616_v27, %v1614_v26  ;;  %v1622_v30 = vld [vmem:[#allocation2 + $0xb0] sm:$0xff]  ;;  %v1624_v31 = vld [vmem:[#allocation2 + $0xb8] sm:$0xff] }
  0x1d   :  { %3505 = vst [vmem:[#allocation24_spill] sm:$0xff] %v1622_v30  ;;  %3506 = vst [vmem:[#allocation25_spill] sm:$0xff] %v1624_v31  ;;  %v1626_v32 = vld [vmem:[#allocation2 + $0xa0] sm:$0xff]  ;;  %v1628_v33 = vld [vmem:[#allocation2 + $0xa8] sm:$0xff]  ;;  %v160_v34 = vadd.f32 %v1624_v31, %v1622_v30 }
  0x1e   :  { %143 = vadd.xlane.f32.xlu1 %v142_v16  ;;  %3507 = vst [vmem:[#allocation26_spill] sm:$0xff] %v1626_v32  ;;  %3508 = vst [vmem:[#allocation27_spill] sm:$0xff] %v1628_v33  ;;  %v157_v35 = vadd.f32 %v1628_v33, %v1626_v32  ;;  %v1634_v36 = vld [vmem:[#allocation2 + $0xd0] sm:$0xff]  ;;  %v1636_v37 = vld [vmem:[#allocation2 + $0xd8] sm:$0xff] }
  0x1f   :  { %140 = vadd.xlane.f32.xlu0 %v139_v17  ;;  %3509 = vst [vmem:[#allocation28_spill] sm:$0xff] %v1634_v36  ;;  %3510 = vst [vmem:[#allocation29_spill] sm:$0xff] %v1636_v37  ;;  %v1638_v38 = vld [vmem:[#allocation2 + $0xc0] sm:$0xff]  ;;  %v1640_v39 = vld [vmem:[#allocation2 + $0xc8] sm:$0xff]  ;;  %v166_v40 = vadd.f32 %v1636_v37, %v1634_v36 }
  0x20   :  { %3511 = vst [vmem:[#allocation30_spill] sm:$0xff] %v1638_v38  ;;  %3512 = vst [vmem:[#allocation31_spill] sm:$0xff] %v1640_v39  ;;  %v163_v41 = vadd.f32 %v1640_v39, %v1638_v38  ;;  %v1646_v42 = vld [vmem:[#allocation2 + $0xf0] sm:$0xff]  ;;  %v1648_v43 = vld [vmem:[#allocation2 + $0xf8] sm:$0xff] }
  0x21   :  { %3513 = vst [vmem:[#allocation32_spill] sm:$0xff] %v1646_v42  ;;  %3514 = vst [vmem:[#allocation33_spill] sm:$0xff] %v1648_v43  ;;  %v1650_v44 = vld [vmem:[#allocation2 + $0xe0] sm:$0xff]  ;;  %v1652_v45 = vld [vmem:[#allocation2 + $0xe8] sm:$0xff]  ;;  %v172_v46 = vadd.f32 %v1648_v43, %v1646_v42 }
  0x22   :  { %149 = vadd.xlane.f32.xlu1 %v148_v22  ;;  %3515 = vst [vmem:[#allocation34_spill] sm:$0xff] %v1650_v44  ;;  %3516 = vst [vmem:[#allocation35_spill] sm:$0xff] %v1652_v45  ;;  %v169_v47 = vadd.f32 %v1652_v45, %v1650_v44  ;;  %v1658_v48 = vld [vmem:[#allocation2 + $0x110] sm:$0xff]  ;;  %v1660_v49 = vld [vmem:[#allocation2 + $0x118] sm:$0xff] }
  0x23   :  { %146 = vadd.xlane.f32.xlu0 %v145_v23  ;;  %3517 = vst [vmem:[#allocation36_spill] sm:$0xff] %v1658_v48  ;;  %3518 = vst [vmem:[#allocation37_spill] sm:$0xff] %v1660_v49  ;;  %v1662_v50 = vld [vmem:[#allocation2 + $0x100] sm:$0xff]  ;;  %v1664_v51 = vld [vmem:[#allocation2 + $0x108] sm:$0xff]  ;;  %v178_v52 = vadd.f32 %v1660_v49, %v1658_v48 }
  0x24   :  { %3519 = vst [vmem:[#allocation38_spill] sm:$0xff] %v1662_v50  ;;  %3520 = vst [vmem:[#allocation39_spill] sm:$0xff] %v1664_v51  ;;  %v175_v53 = vadd.f32 %v1664_v51, %v1662_v50  ;;  %v1670_v54 = vld [vmem:[#allocation2 + $0x130] sm:$0xff]  ;;  %v1672_v55 = vld [vmem:[#allocation2 + $0x138] sm:$0xff] }
  0x25   :  { %3521 = vst [vmem:[#allocation40_spill] sm:$0xff] %v1670_v54  ;;  %3522 = vst [vmem:[#allocation41_spill] sm:$0xff] %v1672_v55  ;;  %v1674_v56 = vld [vmem:[#allocation2 + $0x120] sm:$0xff]  ;;  %v1676_v57 = vld [vmem:[#allocation2 + $0x128] sm:$0xff]  ;;  %v184_v58 = vadd.f32 %v1672_v55, %v1670_v54 }
  0x26   :  { %155 = vadd.xlane.f32.xlu1 %v154_v28  ;;  %3523 = vst [vmem:[#allocation42_spill] sm:$0xff] %v1674_v56  ;;  %3524 = vst [vmem:[#allocation43_spill] sm:$0xff] %v1676_v57  ;;  %v181_v59 = vadd.f32 %v1676_v57, %v1674_v56  ;;  %v1682_v60 = vld [vmem:[#allocation2 + $0x150] sm:$0xff]  ;;  %v1684_v61 = vld [vmem:[#allocation2 + $0x158] sm:$0xff] }
  0x27   :  { %152 = vadd.xlane.f32.xlu0 %v151_v29  ;;  %3525 = vst [vmem:[#allocation44_spill] sm:$0xff] %v1682_v60  ;;  %3526 = vst [vmem:[#allocation45_spill] sm:$0xff] %v1684_v61  ;;  %v1686_v62 = vld [vmem:[#allocation2 + $0x140] sm:$0xff]  ;;  %v1688_v63 = vld [vmem:[#allocation2 + $0x148] sm:$0xff]  ;;  %v190_v3 = vadd.f32 %v1684_v61, %v1682_v60 }
  0x28   :  { %3527 = vst [vmem:[#allocation46_spill] sm:$0xff] %v1686_v62  ;;  %3528 = vst [vmem:[#allocation47_spill] sm:$0xff] %v1688_v63  ;;  %v187_v7 = vadd.f32 %v1688_v63, %v1686_v62  ;;  %v1694_v10 = vld [vmem:[#allocation2 + $0x170] sm:$0xff]  ;;  %v1696_v11 = vld [vmem:[#allocation2 + $0x178] sm:$0xff] }
  0x29   :  { %3529 = vst [vmem:[#allocation48_spill] sm:$0xff] %v1694_v10  ;;  %3530 = vst [vmem:[#allocation49_spill] sm:$0xff] %v1696_v11  ;;  %v1698_v16 = vld [vmem:[#allocation2 + $0x160] sm:$0xff]  ;;  %v1700_v17 = vld [vmem:[#allocation2 + $0x168] sm:$0xff]  ;;  %v196_v22 = vadd.f32 %v1696_v11, %v1694_v10 }
  0x2a   :  { %161 = vadd.xlane.f32.xlu1 %v160_v34  ;;  %3531 = vst [vmem:[#allocation50_spill] sm:$0xff] %v1698_v16  ;;  %3532 = vst [vmem:[#allocation51_spill] sm:$0xff] %v1700_v17  ;;  %v193_v23 = vadd.f32 %v1700_v17, %v1698_v16  ;;  %v1706_v28 = vld [vmem:[#allocation2 + $0x190] sm:$0xff]  ;;  %v1708_v29 = vld [vmem:[#allocation2 + $0x198] sm:$0xff] }
  0x2b   :  { %158 = vadd.xlane.f32.xlu0 %v157_v35  ;;  %3533 = vst [vmem:[#allocation52_spill] sm:$0xff] %v1706_v28  ;;  %3534 = vst [vmem:[#allocation53_spill] sm:$0xff] %v1708_v29  ;;  %v1710_v34 = vld [vmem:[#allocation2 + $0x180] sm:$0xff]  ;;  %v1712_v35 = vld [vmem:[#allocation2 + $0x188] sm:$0xff] }
  0x2c   :  { %3535 = vst [vmem:[#allocation54_spill] sm:$0xff] %v1710_v34  ;;  %3536 = vst [vmem:[#allocation55_spill] sm:$0xff] %v1712_v35 }
  0x2e   :  { %167 = vadd.xlane.f32.xlu1 %v166_v40  ;;  %v202_v40 = vadd.f32 %v1708_v29, %v1706_v28 }
  0x2f   :  { %164 = vadd.xlane.f32.xlu0 %v163_v41  ;;  %v199_v41 = vadd.f32 %v1712_v35, %v1710_v34 }
  0x32   :  { %173 = vadd.xlane.f32.xlu1 %v172_v46  ;;  %v1718_v46 = vld [vmem:[#allocation2 + $0x1b0] sm:$0xff] }
  0x33   :  { %170 = vadd.xlane.f32.xlu0 %v169_v47  ;;  %3537 = vst [vmem:[#allocation56_spill] sm:$0xff] %v1718_v46  ;;  %v1720_v47 = vld [vmem:[#allocation2 + $0x1b8] sm:$0xff] }
  0x34   :  { %3538 = vst [vmem:[#allocation57_spill] sm:$0xff] %v1720_v47 }
  0x36   :  { %179 = vadd.xlane.f32.xlu1 %v178_v52  ;;  %v1722_v52 = vld [vmem:[#allocation2 + $0x1a0] sm:$0xff] }
  0x37   :  { %176 = vadd.xlane.f32.xlu0 %v175_v53  ;;  %3539 = vst [vmem:[#allocation58_spill] sm:$0xff] %v1722_v52  ;;  %v1724_v53 = vld [vmem:[#allocation2 + $0x1a8] sm:$0xff] }
  0x38   :  { %3540 = vst [vmem:[#allocation59_spill] sm:$0xff] %v1724_v53 }
  0x3a   :  { %185 = vadd.xlane.f32.xlu1 %v184_v58  ;;  %v208_v58 = vadd.f32 %v1720_v47, %v1718_v46  ;;  %v1744_v47 = vld [vmem:[#allocation2 + $0x1f8] sm:$0xff] }
  0x3b   :  { %182 = vadd.xlane.f32.xlu0 %v181_v59  ;;  %v205_v59 = vadd.f32 %v1724_v53, %v1722_v52  ;;  %3546 = vst [vmem:[#allocation65_spill] sm:$0xff] %v1744_v47  ;;  %v1746_v53 = vld [vmem:[#allocation2 + $0x1e0] sm:$0xff]  ;;  %v1748_v52 = vld [vmem:[#allocation2 + $0x1e8] sm:$0xff] }
  0x3c   :  { %3547 = vst [vmem:[#allocation66_spill] sm:$0xff] %v1746_v53  ;;  %3548 = vst [vmem:[#allocation67_spill] sm:$0xff] %v1748_v52 }
  0x3e   :  { %191 = vadd.xlane.f32.xlu1 %v190_v3  ;;  %v1730_v3 = vld [vmem:[#allocation2 + $0x1d0] sm:$0xff] }
  0x3f   :  { %188 = vadd.xlane.f32.xlu0 %v187_v7  ;;  %3541 = vst [vmem:[#allocation60_spill] sm:$0xff] %v1730_v3  ;;  %v1732_v7 = vld [vmem:[#allocation2 + $0x1d8] sm:$0xff] }
  0x40   :  { %3542 = vst [vmem:[#allocation61_spill] sm:$0xff] %v1732_v7  ;;  %v214_v35 = vadd.f32 %v1732_v7, %v1730_v3  ;;  %v1756_v7 = vld [vmem:[#allocation2 + $0x218] sm:$0xff] }
  0x41   :  { %3550 = vst [vmem:[#allocation69_spill] sm:$0xff] %v1756_v7 }
  0x42   :  { %197 = vadd.xlane.f32.xlu1 %v196_v22  ;;  %v1734_v22 = vld [vmem:[#allocation2 + $0x1c0] sm:$0xff] }
  0x43   :  { %194 = vadd.xlane.f32.xlu0 %v193_v23  ;;  %3543 = vst [vmem:[#allocation62_spill] sm:$0xff] %v1734_v22  ;;  %v1736_v23 = vld [vmem:[#allocation2 + $0x1c8] sm:$0xff] }
  0x44   :  { %3544 = vst [vmem:[#allocation63_spill] sm:$0xff] %v1736_v23 }
  0x46   :  { %203 = vadd.xlane.f32.xlu1 %v202_v40  ;;  %v211_v40 = vadd.f32 %v1736_v23, %v1734_v22  ;;  %v1758_v23 = vld [vmem:[#allocation2 + $0x200] sm:$0xff]  ;;  %v1760_v22 = vld [vmem:[#allocation2 + $0x208] sm:$0xff] }
  0x47   :  { %200 = vadd.xlane.f32.xlu0 %v199_v41  ;;  %v1742_v41 = vld [vmem:[#allocation2 + $0x1f0] sm:$0xff]  ;;  %3551 = vst [vmem:[#allocation70_spill] sm:$0xff] %v1758_v23  ;;  %3552 = vst [vmem:[#allocation71_spill] sm:$0xff] %v1760_v22 }
  0x48   :  { %3545 = vst [vmem:[#allocation64_spill] sm:$0xff] %v1742_v41  ;;  %v220_v46 = vadd.f32 %v1744_v47, %v1742_v41  ;;  %v1768_v47 = vld [vmem:[#allocation2 + $0x238] sm:$0xff] }
  0x49   :  { %3554 = vst [vmem:[#allocation73_spill] sm:$0xff] %v1768_v47 }
  0x4a   :  { %209 = vadd.xlane.f32.xlu1 %v208_v58  ;;  %v217_v58 = vadd.f32 %v1748_v52, %v1746_v53  ;;  %v1770_v52 = vld [vmem:[#allocation2 + $0x220] sm:$0xff]  ;;  %v1772_v53 = vld [vmem:[#allocation2 + $0x228] sm:$0xff] }
  0x4b   :  { %206 = vadd.xlane.f32.xlu0 %v205_v59  ;;  %v1754_v59 = vld [vmem:[#allocation2 + $0x210] sm:$0xff]  ;;  %3555 = vst [vmem:[#allocation74_spill] sm:$0xff] %v1770_v52  ;;  %3556 = vst [vmem:[#allocation75_spill] sm:$0xff] %v1772_v53 }
  0x4c   :  { %3549 = vst [vmem:[#allocation68_spill] sm:$0xff] %v1754_v59  ;;  %v226_v3 = vadd.f32 %v1756_v7, %v1754_v59  ;;  %v1780_v7 = vld [vmem:[#allocation2 + $0x258] sm:$0xff] }
  0x4d   :  { %3558 = vst [vmem:[#allocation77_spill] sm:$0xff] %v1780_v7 }
  0x4e   :  { %215 = vadd.xlane.f32.xlu1 %v214_v35  ;;  %v223_v35 = vadd.f32 %v1760_v22, %v1758_v23  ;;  %v1782_v22 = vld [vmem:[#allocation2 + $0x240] sm:$0xff]  ;;  %v1784_v23 = vld [vmem:[#allocation2 + $0x248] sm:$0xff] }
  0x4f   :  { %212 = vadd.xlane.f32.xlu0 %v211_v40  ;;  %v1766_v40 = vld [vmem:[#allocation2 + $0x230] sm:$0xff]  ;;  %3559 = vst [vmem:[#allocation78_spill] sm:$0xff] %v1782_v22  ;;  %3560 = vst [vmem:[#allocation79_spill] sm:$0xff] %v1784_v23 }
  0x50   :  { %3553 = vst [vmem:[#allocation72_spill] sm:$0xff] %v1766_v40  ;;  %v232_v41 = vadd.f32 %v1768_v47, %v1766_v40  ;;  %v1792_v47 = vld [vmem:[#allocation2 + $0x278] sm:$0xff] }
  0x51   :  { %3562 = vst [vmem:[#allocation81_spill] sm:$0xff] %v1792_v47 }
  0x52   :  { %221 = vadd.xlane.f32.xlu1 %v220_v46  ;;  %v229_v46 = vadd.f32 %v1772_v53, %v1770_v52  ;;  %v1794_v53 = vld [vmem:[#allocation2 + $0x260] sm:$0xff]  ;;  %v1796_v52 = vld [vmem:[#allocation2 + $0x268] sm:$0xff] }
  0x53   :  { %218 = vadd.xlane.f32.xlu0 %v217_v58  ;;  %v1778_v58 = vld [vmem:[#allocation2 + $0x250] sm:$0xff]  ;;  %3563 = vst [vmem:[#allocation82_spill] sm:$0xff] %v1794_v53  ;;  %3564 = vst [vmem:[#allocation83_spill] sm:$0xff] %v1796_v52 }
  0x54   :  { %3557 = vst [vmem:[#allocation76_spill] sm:$0xff] %v1778_v58  ;;  %v238_v59 = vadd.f32 %v1780_v7, %v1778_v58  ;;  %v1804_v7 = vld [vmem:[#allocation2 + $0x298] sm:$0xff] }
  0x55   :  { %3566 = vst [vmem:[#allocation85_spill] sm:$0xff] %v1804_v7 }
  0x56   :  { %227 = vadd.xlane.f32.xlu1 %v226_v3  ;;  %v235_v3 = vadd.f32 %v1784_v23, %v1782_v22  ;;  %v1806_v23 = vld [vmem:[#allocation2 + $0x280] sm:$0xff]  ;;  %v1808_v22 = vld [vmem:[#allocation2 + $0x288] sm:$0xff] }
  0x57   :  { %224 = vadd.xlane.f32.xlu0 %v223_v35  ;;  %v1790_v35 = vld [vmem:[#allocation2 + $0x270] sm:$0xff]  ;;  %3567 = vst [vmem:[#allocation86_spill] sm:$0xff] %v1806_v23  ;;  %3568 = vst [vmem:[#allocation87_spill] sm:$0xff] %v1808_v22 }
  0x58   :  { %3561 = vst [vmem:[#allocation80_spill] sm:$0xff] %v1790_v35  ;;  %v244_v40 = vadd.f32 %v1792_v47, %v1790_v35  ;;  %v1816_v47 = vld [vmem:[#allocation2 + $0x2b8] sm:$0xff] }
  0x59   :  { %3570 = vst [vmem:[#allocation89_spill] sm:$0xff] %v1816_v47 }
  0x5a   :  { %233 = vadd.xlane.f32.xlu1 %v232_v41  ;;  %v241_v41 = vadd.f32 %v1796_v52, %v1794_v53  ;;  %v1818_v52 = vld [vmem:[#allocation2 + $0x2a0] sm:$0xff]  ;;  %v1820_v53 = vld [vmem:[#allocation2 + $0x2a8] sm:$0xff] }
  0x5b   :  { %230 = vadd.xlane.f32.xlu0 %v229_v46  ;;  %v1802_v46 = vld [vmem:[#allocation2 + $0x290] sm:$0xff]  ;;  %3571 = vst [vmem:[#allocation90_spill] sm:$0xff] %v1818_v52  ;;  %3572 = vst [vmem:[#allocation91_spill] sm:$0xff] %v1820_v53 }
  0x5c   :  { %3565 = vst [vmem:[#allocation84_spill] sm:$0xff] %v1802_v46  ;;  %v250_v58 = vadd.f32 %v1804_v7, %v1802_v46  ;;  %v1828_v7 = vld [vmem:[#allocation2 + $0x2d8] sm:$0xff] }
  0x5d   :  { %3573 = vst [vmem:[#allocation92_spill] sm:$0xff] %v1828_v7 }
  0x5e   :  { %239 = vadd.xlane.f32.xlu1 %v238_v59  ;;  %v247_v59 = vadd.f32 %v1808_v22, %v1806_v23  ;;  %v1830_v22 = vld [vmem:[#allocation2 + $0x2c0] sm:$0xff]  ;;  %v1832_v23 = vld [vmem:[#allocation2 + $0x2c8] sm:$0xff] }
  0x5f   :  { %236 = vadd.xlane.f32.xlu0 %v235_v3  ;;  %v1814_v3 = vld [vmem:[#allocation2 + $0x2b0] sm:$0xff]  ;;  %3574 = vst [vmem:[#allocation93_spill] sm:$0xff] %v1830_v22  ;;  %3575 = vst [vmem:[#allocation94_spill] sm:$0xff] %v1832_v23 }
  0x60   :  { %3569 = vst [vmem:[#allocation88_spill] sm:$0xff] %v1814_v3  ;;  %v256_v35 = vadd.f32 %v1816_v47, %v1814_v3  ;;  %v1840_v47 = vld [vmem:[#allocation2 + $0x2f8] sm:$0xff] }
  0x61   :  { %3576 = vst [vmem:[#allocation95_spill] sm:$0xff] %v1840_v47 }
  0x62   :  { %245 = vadd.xlane.f32.xlu1 %v244_v40  ;;  %v253_v40 = vadd.f32 %v1820_v53, %v1818_v52  ;;  %v1842_v53 = vld [vmem:[#allocation2 + $0x2e0] sm:$0xff]  ;;  %v1844_v52 = vld [vmem:[#allocation2 + $0x2e8] sm:$0xff] }
  0x63   :  { %242 = vadd.xlane.f32.xlu0 %v241_v41  ;;  %v1826_v41 = vld [vmem:[#allocation2 + $0x2d0] sm:$0xff]  ;;  %3577 = vst [vmem:[#allocation96_spill] sm:$0xff] %v1844_v52 }
  0x64   :  { %v262_v46 = vadd.f32 %v1828_v7, %v1826_v41  ;;  %v272_v7 = vmul.f32 %v1570_v4, %v1570_v4 }
  0x66   :  { %251 = vadd.xlane.f32.xlu1 %v250_v58  ;;  %v259_v58 = vadd.f32 %v1832_v23, %v1830_v22  ;;  %v265_v23 = vadd.f32 %v1844_v52, %v1842_v53  ;;  %v271_v22 = vmul.f32 %v1566_v2, %v1566_v2  ;;  %v276_v52 = vmul.f32 %v1564_v1, %v1564_v1 }
  0x67   :  { %248 = vadd.xlane.f32.xlu0 %v247_v59  ;;  %v1838_v59 = vld [vmem:[#allocation2 + $0x2f0] sm:$0xff] }
  0x68   :  { %v268_v3 = vadd.f32 %v1840_v47, %v1838_v59  ;;  %v277_v47 = vmul.f32 %v1572_v5, %v1572_v5 }
  0x6a   :  { %257 = vadd.xlane.f32.xlu1 %v256_v35  ;;  %v273_v35 = vmul.f32 %v1578_v8, %v1578_v8  ;;  %v278_v8 = vmul.f32 %v1574_v6, %v1574_v6 }
  0x6b   :  { %254 = vadd.xlane.f32.xlu0 %v253_v40  ;;  %v274_v40 = vmul.f32 %v1580_v9, %v1580_v9  ;;  %v367_v9 = vadd.f32 %v272_v7, %v271_v22  ;;  %v280_v7 = vmul.f32 %v1592_v15, %v1592_v15 }
  0x6c   :  { %v376_v2 = vadd.f32 %v278_v8, %v277_v47  ;;  %v286_v8 = vmul.f32 %v1600_v19, %v1600_v19 }
  0x6e   :  { %263 = vadd.xlane.f32.xlu1 %v262_v46  ;;  %v370_v46 = vadd.f32 %v274_v40, %v273_v35  ;;  %v282_v35 = vmul.f32 %v1588_v13, %v1588_v13 }
  0x6f   :  { %260 = vadd.xlane.f32.xlu0 %v259_v58  ;;  %v275_v58 = vmul.f32 %v1562_v0, %v1562_v0 }
  0x71   :  { %v373_v40 = vadd.f32 %v276_v52, %v275_v58  ;;  %v284_v52 = vmul.f32 %v1604_v21, %v1604_v21 }
  0x72   :  { %269 = vadd.xlane.f32.xlu1 %v268_v3  ;;  %v281_v3 = vmul.f32 %v1586_v12, %v1586_v12 }
  0x73   :  { %266 = vadd.xlane.f32.xlu0 %v265_v23  ;;  %v279_v23 = vmul.f32 %v1590_v14, %v1590_v14 }
  0x74   :  { %v382_v22 = vadd.f32 %v282_v35, %v281_v3  ;;  %v290_v3 = vmul.f32 %v1612_v25, %v1612_v25 }
  0x75   :  { %v379_v47 = vadd.f32 %v280_v7, %v279_v23  ;;  %v288_v23 = vmul.f32 %v1616_v27, %v1616_v27 }
  0x76   :  { %371 = vadd.xlane.f32.xlu1 %v370_v46  ;;  %v285_v46 = vmul.f32 %v1598_v18, %v1598_v18 }
  0x77   :  { %368 = vadd.xlane.f32.xlu0 %v367_v9  ;;  %v283_v9 = vmul.f32 %v1602_v20, %v1602_v20 }
  0x78   :  { %v388_v58 = vadd.f32 %v286_v8, %v285_v46  ;;  %v294_v46 = vmul.f32 %v1624_v31, %v1624_v31 }
  0x79   :  { %v385_v35 = vadd.f32 %v284_v52, %v283_v9  ;;  %v292_v9 = vmul.f32 %v1628_v33, %v1628_v33 }
  0x7a   :  { %377 = vadd.xlane.f32.xlu1 %v376_v2  ;;  %v289_v2 = vmul.f32 %v1610_v24, %v1610_v24 }
  0x7b   :  { %374 = vadd.xlane.f32.xlu0 %v373_v40  ;;  %v287_v40 = vmul.f32 %v1614_v26, %v1614_v26 }
  0x7c   :  { %v394_v7 = vadd.f32 %v290_v3, %v289_v2  ;;  %v298_v2 = vmul.f32 %v1636_v37, %v1636_v37 }
  0x7d   :  { %v391_v8 = vadd.f32 %v288_v23, %v287_v40  ;;  %v296_v40 = vmul.f32 %v1640_v39, %v1640_v39 }
  0x7e   :  { %383 = vadd.xlane.f32.xlu1 %v382_v22  ;;  %v293_v22 = vmul.f32 %v1622_v30, %v1622_v30 }
  0x7f   :  { %380 = vadd.xlane.f32.xlu0 %v379_v47  ;;  %v291_v47 = vmul.f32 %v1626_v32, %v1626_v32 }
  0x80   :  { %v400_v52 = vadd.f32 %v294_v46, %v293_v22  ;;  %v302_v22 = vmul.f32 %v1648_v43, %v1648_v43 }
  0x81   :  { %v397_v3 = vadd.f32 %v292_v9, %v291_v47  ;;  %v300_v47 = vmul.f32 %v1652_v45, %v1652_v45  ;;  %v3614_v45 = vld [vmem:[#allocation91_spill] sm:$0xff] }
  0x82   :  { %389 = vadd.xlane.f32.xlu1 %v388_v58  ;;  %v297_v58 = vmul.f32 %v1634_v36, %v1634_v36 }
  0x83   :  { %386 = vadd.xlane.f32.xlu0 %v385_v35  ;;  %v295_v35 = vmul.f32 %v1638_v38, %v1638_v38 }
  0x84   :  { %v406_v23 = vadd.f32 %v298_v2, %v297_v58  ;;  %v306_v58 = vmul.f32 %v1660_v49, %v1660_v49  ;;  %v3610_v49 = vld [vmem:[#allocation87_spill] sm:$0xff] }
  0x85   :  { %v403_v46 = vadd.f32 %v296_v40, %v295_v35  ;;  %v304_v35 = vmul.f32 %v1664_v51, %v1664_v51  ;;  %v3606_v51 = vld [vmem:[#allocation83_spill] sm:$0xff] }
  0x86   :  { %395 = vadd.xlane.f32.xlu1 %v394_v7  ;;  %v301_v7 = vmul.f32 %v1646_v42, %v1646_v42 }
  0x87   :  { %392 = vadd.xlane.f32.xlu0 %v391_v8  ;;  %v299_v8 = vmul.f32 %v1650_v44, %v1650_v44 }
  0x88   :  { %v412_v9 = vadd.f32 %v302_v22, %v301_v7  ;;  %v310_v7 = vmul.f32 %v1672_v55, %v1672_v55  ;;  %v3602_v55 = vld [vmem:[#allocation79_spill] sm:$0xff] }
  0x89   :  { %v409_v2 = vadd.f32 %v300_v47, %v299_v8  ;;  %v308_v8 = vmul.f32 %v1676_v57, %v1676_v57  ;;  %v3598_v57 = vld [vmem:[#allocation75_spill] sm:$0xff] }
  0x8a   :  { %401 = vadd.xlane.f32.xlu1 %v400_v52  ;;  %v305_v52 = vmul.f32 %v1658_v48, %v1658_v48 }
  0x8b   :  { %398 = vadd.xlane.f32.xlu0 %v397_v3  ;;  %v303_v3 = vmul.f32 %v1662_v50, %v1662_v50 }
  0x8c   :  { %v418_v40 = vadd.f32 %v306_v58, %v305_v52  ;;  %v314_v52 = vmul.f32 %v1684_v61, %v1684_v61  ;;  %v3594_v61 = vld [vmem:[#allocation71_spill] sm:$0xff] }
  0x8d   :  { %v415_v22 = vadd.f32 %v304_v35, %v303_v3  ;;  %v312_v3 = vmul.f32 %v1688_v63, %v1688_v63  ;;  %v3590_v63 = vld [vmem:[#allocation67_spill] sm:$0xff] }
  0x8e   :  { %407 = vadd.xlane.f32.xlu1 %v406_v23  ;;  %v309_v23 = vmul.f32 %v1670_v54, %v1670_v54 }
  0x8f   :  { %404 = vadd.xlane.f32.xlu0 %v403_v46  ;;  %v307_v46 = vmul.f32 %v1674_v56, %v1674_v56 }
  0x90   :  { %v424_v47 = vadd.f32 %v310_v7, %v309_v23  ;;  %v318_v23 = vmul.f32 %v1696_v11, %v1696_v11  ;;  %v3579_v11 = vld [vmem:[#allocation56_spill] sm:$0xff] }
  0x91   :  { %v421_v58 = vadd.f32 %v308_v8, %v307_v46  ;;  %v316_v46 = vmul.f32 %v1700_v17, %v1700_v17 }
  0x92   :  { %413 = vadd.xlane.f32.xlu1 %v412_v9  ;;  %v313_v9 = vmul.f32 %v1682_v60, %v1682_v60 }
  0x93   :  { %410 = vadd.xlane.f32.xlu0 %v409_v2  ;;  %v311_v2 = vmul.f32 %v1686_v62, %v1686_v62 }
  0x94   :  { %v430_v35 = vadd.f32 %v314_v52, %v313_v9  ;;  %v322_v9 = vmul.f32 %v1708_v29, %v1708_v29 }
  0x95   :  { %v427_v7 = vadd.f32 %v312_v3, %v311_v2  ;;  %v3578_v2 = vld [vmem:[#allocation55_spill] sm:$0xff] }
  0x96   :  { %419 = vadd.xlane.f32.xlu1 %v418_v40  ;;  %v317_v40 = vmul.f32 %v1694_v10, %v1694_v10  ;;  %v320_v3 = vmul.f32 %v3578_v2, %v3578_v2  ;;  %v3586_v2 = vld [vmem:[#allocation63_spill] sm:$0xff] }
  0x97   :  { %416 = vadd.xlane.f32.xlu0 %v415_v22  ;;  %v315_v22 = vmul.f32 %v1698_v16, %v1698_v16 }
  0x98   :  { %v436_v8 = vadd.f32 %v318_v23, %v317_v40  ;;  %v3580_v40 = vld [vmem:[#allocation57_spill] sm:$0xff] }
  0x99   :  { %v433_v52 = vadd.f32 %v316_v46, %v315_v22  ;;  %v326_v23 = vmul.f32 %v3580_v40, %v3580_v40  ;;  %v3582_v46 = vld [vmem:[#allocation59_spill] sm:$0xff] }
  0x9a   :  { %425 = vadd.xlane.f32.xlu1 %v424_v47  ;;  %v321_v47 = vmul.f32 %v1706_v28, %v1706_v28 }
  0x9b   :  { %422 = vadd.xlane.f32.xlu0 %v421_v58  ;;  %v319_v58 = vmul.f32 %v1710_v34, %v1710_v34  ;;  %v324_v34 = vmul.f32 %v3582_v46, %v3582_v46  ;;  %v328_v46 = vmul.f32 %v3586_v2, %v3586_v2  ;;  %v332_v2 = vmul.f32 %v3590_v63, %v3590_v63 }
  0x9c   :  { %v442_v16 = vadd.f32 %v322_v9, %v321_v47  ;;  %v3583_v47 = vld [vmem:[#allocation60_spill] sm:$0xff]  ;;  %v336_v63 = vmul.f32 %v3594_v61, %v3594_v61  ;;  %v340_v61 = vmul.f32 %v3598_v57, %v3598_v57  ;;  %v344_v57 = vmul.f32 %v3602_v55, %v3602_v55 }
  0x9d   :  { %v439_v29 = vadd.f32 %v320_v3, %v319_v58  ;;  %v329_v9 = vmul.f32 %v3583_v47, %v3583_v47  ;;  %v3585_v3 = vld [vmem:[#allocation62_spill] sm:$0xff]  ;;  %v3588_v47 = vld [vmem:[#allocation65_spill] sm:$0xff]  ;;  %v348_v55 = vmul.f32 %v3606_v51, %v3606_v51  ;;  %v352_v51 = vmul.f32 %v3610_v49, %v3610_v49 }
  0x9e   :  { %431 = vadd.xlane.f32.xlu1 %v430_v35  ;;  %v325_v35 = vmul.f32 %v3579_v11, %v3579_v11  ;;  %v3584_v11 = vld [vmem:[#allocation61_spill] sm:$0xff]  ;;  %v356_v49 = vmul.f32 %v3614_v45, %v3614_v45 }
  0x9f   :  { %428 = vadd.xlane.f32.xlu0 %v427_v7  ;;  %v3581_v7 = vld [vmem:[#allocation58_spill] sm:$0xff]  ;;  %v330_v40 = vmul.f32 %v3584_v11, %v3584_v11  ;;  %v334_v11 = vmul.f32 %v3588_v47, %v3588_v47 }
  0xa0   :  { %v323_v22 = vmul.f32 %v3581_v7, %v3581_v7  ;;  %v327_v7 = vmul.f32 %v3585_v3, %v3585_v3 }
  0xa2   :  { %437 = vadd.xlane.f32.xlu1 %v436_v8  ;;  %v448_v8 = vadd.f32 %v326_v23, %v325_v35  ;;  %v445_v58 = vadd.f32 %v324_v34, %v323_v22  ;;  %v3587_v35 = vld [vmem:[#allocation64_spill] sm:$0xff]  ;;  %v451_v34 = vadd.f32 %v328_v46, %v327_v7  ;;  %v3589_v22 = vld [vmem:[#allocation66_spill] sm:$0xff] }
  0xa3   :  { %434 = vadd.xlane.f32.xlu0 %v433_v52  ;;  %v1958_v28 = vpop.xlane.xlu1 %134  ;;  %v333_v23 = vmul.f32 %v3587_v35, %v3587_v35  ;;  %v331_v3 = vmul.f32 %v3589_v22, %v3589_v22  ;;  %v3592_v35 = vld [vmem:[#allocation69_spill] sm:$0xff]  ;;  %v3593_v46 = vld [vmem:[#allocation70_spill] sm:$0xff] }
  0xa4   :  { %v1964_v17 = vpop.xlane.xlu0 %128  ;;  %v338_v47 = vmul.f32 %v3592_v35, %v3592_v35  ;;  %v335_v22 = vmul.f32 %v3593_v46, %v3593_v46 }
  0xa5   :  { %v457_v7 = vadd.f32 %v332_v2, %v331_v3  ;;  %v3597_v3 = vld [vmem:[#allocation74_spill] sm:$0xff] }
  0xa6   :  { %443 = vadd.xlane.f32.xlu1 %v442_v16  ;;  %v454_v16 = vadd.f32 %v330_v40, %v329_v9  ;;  %v460_v40 = vadd.f32 %v334_v11, %v333_v23  ;;  %v463_v2 = vadd.f32 %v336_v63, %v335_v22  ;;  %v339_v46 = vmul.f32 %v3597_v3, %v3597_v3  ;;  %v3601_v22 = vld [vmem:[#allocation78_spill] sm:$0xff] }
  0xa7   :  { %440 = vadd.xlane.f32.xlu0 %v439_v29  ;;  %v1970_v52 = vpop.xlane.xlu1 %137  ;;  %v343_v3 = vmul.f32 %v3601_v22, %v3601_v22 }
  0xa8   :  { %v1976_v10 = vpop.xlane.xlu0 %131  ;;  %v469_v63 = vadd.f32 %v340_v61, %v339_v46  ;;  %v3605_v46 = vld [vmem:[#allocation82_spill] sm:$0xff] }
  0xa9   :  { %v475_v61 = vadd.f32 %v344_v57, %v343_v3  ;;  %v347_v22 = vmul.f32 %v3605_v46, %v3605_v46  ;;  %v3609_v3 = vld [vmem:[#allocation86_spill] sm:$0xff] }
  0xaa   :  { %449 = vadd.xlane.f32.xlu1 %v448_v8  ;;  %v3591_v8 = vld [vmem:[#allocation68_spill] sm:$0xff]  ;;  %v351_v46 = vmul.f32 %v3609_v3, %v3609_v3 }
  0xab   :  { %446 = vadd.xlane.f32.xlu0 %v445_v58  ;;  %v1982_v29 = vpop.xlane.xlu1 %143  ;;  %v337_v9 = vmul.f32 %v3591_v8, %v3591_v8  ;;  %v3596_v8 = vld [vmem:[#allocation73_spill] sm:$0xff]  ;;  %v481_v57 = vadd.f32 %v348_v55, %v347_v22  ;;  %v3613_v22 = vld [vmem:[#allocation90_spill] sm:$0xff] }
  0xac   :  { %v1988_v62 = vpop.xlane.xlu0 %140  ;;  %v342_v35 = vmul.f32 %v3596_v8, %v3596_v8  ;;  %v487_v55 = vadd.f32 %v352_v51, %v351_v46  ;;  %v355_v3 = vmul.f32 %v3613_v22, %v3613_v22  ;;  %v3616_v46 = vld [vmem:[#allocation93_spill] sm:$0xff] }
  0xad   :  { %v466_v11 = vadd.f32 %v338_v47, %v337_v9  ;;  %v359_v22 = vmul.f32 %v3616_v46, %v3616_v46 }
  0xae   :  { %455 = vadd.xlane.f32.xlu1 %v454_v16  ;;  %v3595_v16 = vld [vmem:[#allocation72_spill] sm:$0xff]  ;;  %v493_v51 = vadd.f32 %v356_v49, %v355_v3  ;;  %v363_v3 = vmul.f32 %v1842_v53, %v1842_v53 }
  0xaf   :  { %452 = vadd.xlane.f32.xlu0 %v451_v34  ;;  %v1994_v58 = vpop.xlane.xlu1 %149  ;;  %v341_v23 = vmul.f32 %v3595_v16, %v3595_v16  ;;  %v3600_v16 = vld [vmem:[#allocation77_spill] sm:$0xff] }
  0xb0   :  { %v2000_v60 = vpop.xlane.xlu0 %146  ;;  %v346_v8 = vmul.f32 %v3600_v16, %v3600_v16 }
  0xb1   :  { %v472_v47 = vadd.f32 %v342_v35, %v341_v23 }
  0xb2   :  { %461 = vadd.xlane.f32.xlu1 %v460_v40  ;;  %v3599_v40 = vld [vmem:[#allocation76_spill] sm:$0xff] }
  0xb3   :  { %458 = vadd.xlane.f32.xlu0 %v457_v7  ;;  %v2006_v34 = vpop.xlane.xlu1 %155  ;;  %v345_v9 = vmul.f32 %v3599_v40, %v3599_v40  ;;  %v3604_v40 = vld [vmem:[#allocation81_spill] sm:$0xff] }
  0xb4   :  { %v2012_v56 = vpop.xlane.xlu0 %152  ;;  %v350_v16 = vmul.f32 %v3604_v40, %v3604_v40 }
  0xb5   :  { %v478_v35 = vadd.f32 %v346_v8, %v345_v9 }
  0xb6   :  { %467 = vadd.xlane.f32.xlu1 %v466_v11  ;;  %v3603_v11 = vld [vmem:[#allocation80_spill] sm:$0xff] }
  0xb7   :  { %464 = vadd.xlane.f32.xlu0 %v463_v2  ;;  %v2018_v7 = vpop.xlane.xlu1 %161  ;;  %v349_v23 = vmul.f32 %v3603_v11, %v3603_v11  ;;  %v3608_v11 = vld [vmem:[#allocation85_spill] sm:$0xff] }
  0xb8   :  { %v2024_v54 = vpop.xlane.xlu0 %158  ;;  %v354_v40 = vmul.f32 %v3608_v11, %v3608_v11  ;;  %v2203_v12 = vmul.f32 0.00390625, %v2018_v7 }
  0xb9   :  { %v484_v8 = vadd.f32 %v350_v16, %v349_v23  ;;  %v2214_v15 = vmul.f32 0.00390625, %v2024_v54 }
  0xba   :  { %473 = vadd.xlane.f32.xlu1 %v472_v47  ;;  %v3607_v47 = vld [vmem:[#allocation84_spill] sm:$0xff]  ;;  %v2268_v25 = vmul.f32 %v2203_v12, %v2203_v12 }
  0xbb   :  { %470 = vadd.xlane.f32.xlu0 %v469_v63  ;;  %v2030_v2 = vpop.xlane.xlu1 %167  ;;  %v353_v9 = vmul.f32 %v3607_v47, %v3607_v47  ;;  %v3612_v47 = vld [vmem:[#allocation89_spill] sm:$0xff] }
  0xbc   :  { %v2036_v50 = vpop.xlane.xlu0 %164  ;;  %v358_v11 = vmul.f32 %v3612_v47, %v3612_v47 }
  0xbd   :  { %v490_v16 = vadd.f32 %v354_v40, %v353_v9  ;;  %v3615_v9 = vld [vmem:[#allocation92_spill] sm:$0xff]  ;;  %v2240_v7 = vmul.f32 0.00390625, %v2036_v50 }
  0xbe   :  { %479 = vadd.xlane.f32.xlu1 %v478_v35  ;;  %v3611_v35 = vld [vmem:[#allocation88_spill] sm:$0xff]  ;;  %v362_v47 = vmul.f32 %v3615_v9, %v3615_v9 }
  0xbf   :  { %476 = vadd.xlane.f32.xlu0 %v475_v61  ;;  %v2042_v63 = vpop.xlane.xlu1 %173  ;;  %v357_v23 = vmul.f32 %v3611_v35, %v3611_v35  ;;  %v3617_v35 = vld [vmem:[#allocation94_spill] sm:$0xff]  ;;  %v3619_v9 = vld [vmem:[#allocation96_spill] sm:$0xff]  ;;  %3636 = vst [vmem:[#allocation101_spill] sm:$0xff] %v2240_v7  ;;  %v2303_v21 = vmul.f32 %v2240_v7, %v2240_v7 }
  0xc0   :  { %v2048_v48 = vpop.xlane.xlu0 %170  ;;  %v360_v45 = vmul.f32 %v3617_v35, %v3617_v35  ;;  %v364_v35 = vmul.f32 %v3619_v9, %v3619_v9  ;;  %v2251_v24 = vmul.f32 0.00390625, %v2042_v63 }
  0xc1   :  { %v496_v40 = vadd.f32 %v358_v11, %v357_v23  ;;  %v2262_v27 = vmul.f32 0.00390625, %v2048_v48  ;;  %v2281_v48 = vmul.f32 %v2214_v15, %v2214_v15 }
  0xc2   :  { %485 = vadd.xlane.f32.xlu1 %v484_v8  ;;  %v361_v8 = vmul.f32 %v1826_v41, %v1826_v41  ;;  %v365_v41 = vmul.f32 %v1838_v59, %v1838_v59  ;;  %v499_v49 = vadd.f32 %v360_v45, %v359_v22  ;;  %v505_v59 = vadd.f32 %v364_v35, %v363_v3  ;;  %v125_v35 = vld [vmem:[%s3257_s1] sm:$0x3]  ;;  %s1526_s1 = smov [#allocation5]  }
  0xc3   :  { %482 = vadd.xlane.f32.xlu0 %v481_v57  ;;  %v2054_v61 = vpop.xlane.xlu1 %179  ;;  %v944_v22 = vlaneseq  ;;  %3637 = vst [vmem:[#allocation102_spill] sm:$0xff] %v2251_v24  ;;  %3638 = vst [vmem:[#allocation103_spill] sm:$0xff] %v2262_v27  ;;  %v2316_v36 = vmul.f32 %v2251_v24, %v2251_v24 }
  0xc4   :  { %v2060_v44 = vpop.xlane.xlu0 %176  ;;  %v502_v11 = vadd.f32 %v362_v47, %v361_v8  ;;  %v2275_v50 = vmul.f32 0.00390625, %v2054_v61 }
  0xc5   :  { %v2288_v63 = vmul.f32 0.00390625, %v2060_v44 }
  0xc6   :  { %491 = vadd.xlane.f32.xlu1 %v490_v16  ;;  %v3618_v16 = vld [vmem:[#allocation95_spill] sm:$0xff]  ;;  %3639 = vst [vmem:[#allocation104_spill] sm:$0xff] %v2275_v50  ;;  %v2340_v7 = vmul.f32 %v2275_v50, %v2275_v50 }
  0xc7   :  { %488 = vadd.xlane.f32.xlu0 %v487_v55  ;;  %v2066_v57 = vpop.xlane.xlu1 %185  ;;  %v366_v23 = vmul.f32 %v3618_v16, %v3618_v16  ;;  %v945_v16 = vshrl.u32 %v944_v22, 7  ;;  %v2115_v22 = vmul.f32 0.00390625, %v1970_v52  ;;  %v2133_v52 = vmul.f32 0.00390625, %v1982_v29  ;;  %3640 = vst [vmem:[#allocation105_spill] sm:$0xff] %v2288_v63 }
  0xc8   :  { %v2072_v43 = vpop.xlane.xlu0 %182  ;;  %3652 = vst [vmem:[#allocation110_spill] sm:$0xff] %v2340_v7  ;;  %v2351_v39 = vmul.f32 %v2288_v63, %v2288_v63 }
  0xc9   :  { %v508_v47 = vadd.f32 %v366_v23, %v365_v41  ;;  %v946_v41 = vsub.s32 0, %v945_v16  ;;  %v950_v23 = vsub.s32 1, %v945_v16  ;;  %3626 = vst [vmem:[#allocation97_spill] sm:$0xff] %v2115_v22  ;;  %v2118_v16 = vmul.f32 0.00390625, %v1976_v10 }
  0xca   :  { %497 = vadd.xlane.f32.xlu1 %v496_v40  ;;  %v2196_v0 = vmul.f32 %v2133_v52, %v2133_v52  ;;  %3656 = vst [vmem:[#allocation112_spill] sm:$0xff] %v2351_v39 }
  0xcb   :  { %494 = vadd.xlane.f32.xlu0 %v493_v51  ;;  %v2078_v55 = vpop.xlane.xlu1 %191 }
  0xcc   :  { %v2084_v46 = vpop.xlane.xlu0 %188  ;;  %v2323_v33 = vmul.f32 0.00390625, %v2078_v55 }
  0xcd   :  { %v2336_v37 = vmul.f32 0.00390625, %v2084_v46 }
  0xce   :  { %503 = vadd.xlane.f32.xlu1 %v502_v11  ;;  %3648 = vst [vmem:[#allocation108_spill] sm:$0xff] %v2323_v33  ;;  %v2388_v63 = vmul.f32 %v2323_v33, %v2323_v33 }
  0xcf   :  { %500 = vadd.xlane.f32.xlu0 %v499_v49  ;;  %v2086_v40 = vpop.xlane.xlu1 %197  ;;  %v2101_v49 = vmul.f32 0.00390625, %v1958_v28  ;;  %3651 = vst [vmem:[#allocation109_spill] sm:$0xff] %v2336_v37  ;;  %v2399_v24 = vmul.f32 %v2336_v37, %v2336_v37 }
  0xd0   :  { %v2088_v8 = vpop.xlane.xlu0 %194  ;;  %v2347_v30 = vmul.f32 0.00390625, %v2086_v40  ;;  %3669 = vst [vmem:[#allocation117_spill] sm:$0xff] %v2388_v63 }
  0xd1   :  { %3624 = vst [vmem:[#allocation95_spill] sm:$0xff] %v2101_v49  ;;  %v2358_v50 = vmul.f32 0.00390625, %v2088_v8  ;;  %3674 = vst [vmem:[#allocation118_spill] sm:$0xff] %v2399_v24 }
  0xd2   :  { %509 = vadd.xlane.f32.xlu1 %v508_v47  ;;  %v126_v47 = vld [vmem:[%s3258_s2] sm:$0x3]  ;;  %3655 = vst [vmem:[#allocation111_spill] sm:$0xff] %v2347_v30  ;;  %s1354_s2 = sshll.u32 %s1526_s1, 4  ;;  %s1355_s2 = int_to_ptr.vmem [resolvable:$true] %s1354_s2 }
  0xd3   :  { %506 = vadd.xlane.f32.xlu0 %v505_v59  ;;  %v2090_v51 = vpop.xlane.xlu1 %203  ;;  %v2112_v59 = vmul.f32 0.00390625, %v1964_v17  ;;  %v2137_v10 = vrot.slane %v126_v47, %v950_v23  ;;  %3659 = vst [vmem:[#allocation113_spill] sm:$0xff] %v2358_v50  ;;  %s1497_s29 = scalar_lea.vmem %s1355_s2, 12288  ;;  %p1502_p9 = scmp.lt.s32.totalorder %s1355_s2, %s1355_s2 }
  0xd4   :  { %v2092_v45 = vpop.xlane.xlu0 %200  ;;  %p1498_p8 = scmp.ne.s32.totalorder %s1355_s2, %s1497_s29  ;;  %p1503_p10 = scmp.lt.s32.totalorder %s1497_s29, %s1497_s29 }
  0xd5   :  { %3620 = vst [vmem:[#allocation91_spill] sm:$0xff] %v2092_v45  ;;  %v2159_v17 = vmul.f32 %v2112_v59, %v2112_v59 }
  0xd6   :  { %p1504_p11 = por %p1503_p10, %p1502_p9 }
  0xd7   :  { %v2094_v53 = vpop.xlane.xlu1 %209 }
  0xd8   :  { %3621 = vst [vmem:[#allocation92_spill] sm:$0xff] %v2094_v53  ;;  %v2096_v9 = vpop.xlane.xlu0 %206  ;;  %v2148_v53 = vmul.f32 %v2101_v49, %v2101_v49  ;;  %v2166_v49 = vmul.f32 0.00390625, %v2000_v60  ;;  %v2185_v60 = vmul.f32 %v2118_v16, %v2118_v16  ;;  %p1505_p12 = pnand %p1504_p11, %p1498_p8 }
  0xd9   :  { %3622 = vst [vmem:[#allocation93_spill] sm:$0xff] %v2096_v9  ;;  %v2126_v9 = vrot.slane %v126_v47, %v946_v41  ;;  %v2155_v47 = vmul.f32 0.00390625, %v1994_v58  ;;  %v2192_v58 = vmul.f32 0.00390625, %v2012_v56  ;;  %v2227_v56 = vmul.f32 0.00390625, %v2030_v2 }
  0xda   :  { %v2233_v54 = vmul.f32 %v2166_v49, %v2166_v49 }
  0xdb   :  { %v2098_v11 = vpop.xlane.xlu1 %215  ;;  %v2220_v13 = vmul.f32 %v2155_v47, %v2155_v47  ;;  %3635 = vst [vmem:[#allocation100_spill] sm:$0xff] %v2227_v56  ;;  %v2292_v31 = vmul.f32 %v2227_v56, %v2227_v56  ;;  %v2310_v56 = vmul.f32 0.00390625, %v2072_v43  ;;  %v2329_v43 = vmul.f32 %v2262_v27, %v2262_v27 }
  0xdc   :  { %3623 = vst [vmem:[#allocation94_spill] sm:$0xff] %v2098_v11  ;;  %v2103_v3 = vpop.xlane.xlu0 %212  ;;  %v2124_v11 = vrot.slane %v125_v35, %v950_v23  ;;  %v2172_v23 = vmul.f32 %v2115_v22, %v2115_v22  ;;  %v2255_v22 = vmul.f32 %v2192_v58, %v2192_v58  ;;  %v3667_v39 = vld [vmem:[#allocation91_spill] sm:$0xff] }
  0xdd   :  { %3625 = vst [vmem:[#allocation96_spill] sm:$0xff] %v2103_v3  ;;  %v2122_v3 = vrot.slane %v125_v35, %v946_v41  ;;  %v2144_v35 = vmul.f32 0.00390625, %v1988_v62  ;;  %v3630_v62 = vld [vmem:[#allocation12_spill] sm:$0xff]  ;;  %v2179_v41 = vmul.f32 0.00390625, %v2006_v34  ;;  %3645 = vst [vmem:[#allocation107_spill] sm:$0xff] %v2310_v56  ;;  %v2377_v8 = vmul.f32 %v2310_v56, %v2310_v56 }
  0xde   :  { %3633 = vst [vmem:[#allocation12_spill] sm:$0xff] %v2203_v12  ;;  %v2371_v12 = vmul.f32 0.00390625, %v2090_v51  ;;  %v2412_v56 = vmul.f32 %v2347_v30, %v2347_v30 }
  0xdf   :  { %v2120_v28 = vpop.xlane.xlu1 %221  ;;  %3628 = vst [vmem:[#allocation99_spill] sm:$0xff] %v2122_v3  ;;  %v3631_v3 = vld [vmem:[#allocation13_spill] sm:$0xff]  ;;  %v2207_v1 = vmul.f32 %v2144_v35, %v2144_v35  ;;  %v2244_v19 = vmul.f32 %v2179_v41, %v2179_v41  ;;  %3664 = vst [vmem:[#allocation116_spill] sm:$0xff] %v2377_v8  ;;  %v3672_v8 = vld [vmem:[#allocation92_spill] sm:$0xff] }
  0xe0   :  { %3627 = vst [vmem:[#allocation98_spill] sm:$0xff] %v2120_v28  ;;  %v2135_v45 = vpop.xlane.xlu0 %218  ;;  %v3629_v28 = vld [vmem:[#allocation10_spill] sm:$0xff]  ;;  %3634 = vst [vmem:[#allocation13_spill] sm:$0xff] %v2214_v15  ;;  %v2299_v15 = vmul.f32 0.00390625, %v2066_v57  ;;  %v2384_v57 = vmul.f32 0.00390625, %v3667_v39  ;;  %v2395_v7 = vmul.f32 0.00390625, %v3672_v8  ;;  %v2436_v37 = vmul.f32 %v2371_v12, %v2371_v12 }
  0xe1   :  { %3632 = vst [vmem:[#allocation10_spill] sm:$0xff] %v2192_v58  ;;  %3663 = vst [vmem:[#allocation115_spill] sm:$0xff] %v2371_v12  ;;  %v3677_v33 = vld [vmem:[#allocation93_spill] sm:$0xff]  ;;  %v2454_v12 = vmul.f32 0.00390625, %v2135_v45 }
  0xe2   :  { %3642 = vst [vmem:[#allocation106_spill] sm:$0xff] %v2299_v15  ;;  %v2364_v27 = vmul.f32 %v2299_v15, %v2299_v15  ;;  %3668 = vst [vmem:[#allocation91_spill] sm:$0xff] %v2384_v57  ;;  %v2406_v63 = vmul.f32 0.00390625, %v3677_v33  ;;  %v2425_v33 = vmul.f32 %v2358_v50, %v2358_v50  ;;  %v2447_v15 = vmul.f32 %v2384_v57, %v2384_v57 }
  0xe3   :  { %v2168_v29 = vpop.xlane.xlu1 %227  ;;  %3673 = vst [vmem:[#allocation92_spill] sm:$0xff] %v2395_v7  ;;  %3679 = vst [vmem:[#allocation119_spill] sm:$0xff] %v2412_v56  ;;  %v3682_v24 = vld [vmem:[#allocation94_spill] sm:$0xff]  ;;  %v2460_v50 = vmul.f32 %v2395_v7, %v2395_v7 }
  0xe4   :  { %v2181_v6 = vpop.xlane.xlu0 %224  ;;  %3660 = vst [vmem:[#allocation114_spill] sm:$0xff] %v2364_v27  ;;  %3678 = vst [vmem:[#allocation93_spill] sm:$0xff] %v2406_v63  ;;  %v2419_v27 = vmul.f32 0.00390625, %v3682_v24  ;;  %v3687_v58 = vld [vmem:[#allocation96_spill] sm:$0xff]  ;;  %v2467_v56 = vmul.f32 0.00390625, %v2168_v29  ;;  %v2473_v45 = vmul.f32 %v2406_v63, %v2406_v63 }
  0xe5   :  { %3684 = vst [vmem:[#allocation120_spill] sm:$0xff] %v2425_v33  ;;  %v2432_v40 = vmul.f32 0.00390625, %v3687_v58  ;;  %3695 = vst [vmem:[#allocation121_spill] sm:$0xff] %v2454_v12  ;;  %v2480_v8 = vmul.f32 0.00390625, %v2181_v6 }
  0xe6   :  { %3683 = vst [vmem:[#allocation94_spill] sm:$0xff] %v2419_v27  ;;  %3696 = vst [vmem:[#allocation122_spill] sm:$0xff] %v2460_v50  ;;  %v2484_v57 = vmul.f32 %v2419_v27, %v2419_v27 }
  0xe7   :  { %v2216_v34 = vpop.xlane.xlu1 %233  ;;  %3688 = vst [vmem:[#allocation96_spill] sm:$0xff] %v2432_v40  ;;  %v3691_v33 = vld [vmem:[#allocation98_spill] sm:$0xff]  ;;  %3699 = vst [vmem:[#allocation123_spill] sm:$0xff] %v2467_v56  ;;  %v2495_v30 = vmul.f32 %v2432_v40, %v2432_v40  ;;  %v2532_v40 = vmul.f32 %v2467_v56, %v2467_v56  ;;  %v2543_v7 = vmul.f32 %v2480_v8, %v2480_v8 }
  0xe8   :  { %v2229_v20 = vpop.xlane.xlu0 %230  ;;  %v2443_v26 = vmul.f32 0.00390625, %v3691_v33  ;;  %3700 = vst [vmem:[#allocation124_spill] sm:$0xff] %v2473_v45  ;;  %3703 = vst [vmem:[#allocation125_spill] sm:$0xff] %v2480_v8  ;;  %v2491_v45 = vmul.f32 0.00390625, %v2216_v34 }
  0xe9   :  { %v2502_v27 = vmul.f32 0.00390625, %v2229_v20  ;;  %v2521_v20 = vmul.f32 %v2454_v12, %v2454_v12  ;;  %3721 = vst [vmem:[#allocation133_spill] sm:$0xff] %v2543_v7 }
  0xea   :  { %3692 = vst [vmem:[#allocation98_spill] sm:$0xff] %v2443_v26  ;;  %3706 = vst [vmem:[#allocation126_spill] sm:$0xff] %v2491_v45  ;;  %v2508_v63 = vmul.f32 %v2443_v26, %v2443_v26  ;;  %v2551_v29 = vmul.f32 %v2491_v45, %v2491_v45 }
  0xeb   :  { %v2264_v2 = vpop.xlane.xlu1 %239  ;;  %3709 = vst [vmem:[#allocation127_spill] sm:$0xff] %v2502_v27  ;;  %3714 = vst [vmem:[#allocation130_spill] sm:$0xff] %v2521_v20  ;;  %v2555_v12 = vmul.f32 %v2502_v27, %v2502_v27 }
  0xec   :  { %v2277_v32 = vpop.xlane.xlu0 %236  ;;  %3710 = vst [vmem:[#allocation128_spill] sm:$0xff] %v2508_v63  ;;  %v2515_v50 = vmul.f32 0.00390625, %v2264_v2  ;;  %3724 = vst [vmem:[#allocation134_spill] sm:$0xff] %v2551_v29 }
  0xed   :  { %v2528_v33 = vmul.f32 0.00390625, %v2277_v32 }
  0xee   :  { %3713 = vst [vmem:[#allocation129_spill] sm:$0xff] %v2515_v50  ;;  %v2571_v27 = vmul.f32 %v2515_v50, %v2515_v50 }
  0xef   :  { %v2312_v61 = vpop.xlane.xlu1 %245  ;;  %3717 = vst [vmem:[#allocation131_spill] sm:$0xff] %v2528_v33  ;;  %v2580_v2 = vmul.f32 %v2528_v33, %v2528_v33 }
  0xf0   :  { %v2325_v44 = vpop.xlane.xlu0 %242  ;;  %v2539_v20 = vmul.f32 0.00390625, %v2312_v61  ;;  %3730 = vst [vmem:[#allocation137_spill] sm:$0xff] %v2571_v27 }
  0xf1   :  { %v2562_v63 = vmul.f32 0.00390625, %v2325_v44  ;;  %3733 = vst [vmem:[#allocation138_spill] sm:$0xff] %v2580_v2 }
  0xf2   :  { %3720 = vst [vmem:[#allocation132_spill] sm:$0xff] %v2539_v20  ;;  %v2590_v61 = vmul.f32 %v2539_v20, %v2539_v20 }
  0xf3   :  { %v2360_v42 = vpop.xlane.xlu1 %251  ;;  %3727 = vst [vmem:[#allocation135_spill] sm:$0xff] %v2562_v63 }
  0xf4   :  { %v2373_v46 = vpop.xlane.xlu0 %248  ;;  %v2567_v45 = vmul.f32 0.00390625, %v2360_v42 }
  0xf6   :  { %3729 = vst [vmem:[#allocation136_spill] sm:$0xff] %v2567_v45 }
  0xf7   :  { %v2408_v55 = vpop.xlane.xlu1 %257 }
  0xf8   :  { %v2421_v39 = vpop.xlane.xlu0 %254 }
  0xf9   :  { %v2624_v8 = vmul.f32 0.00390625, %v2421_v39 }
  0xfb   :  { %v2456_v51 = vpop.xlane.xlu1 %263 }
  0xfc   :  { %v2469_v58 = vpop.xlane.xlu0 %260  ;;  %v2635_v7 = vmul.f32 0.00390625, %v2456_v51 }
  0xff   :  { %v2504_v24 = vpop.xlane.xlu1 %269 }
 0x100   :  { %v2517_v6 = vpop.xlane.xlu0 %266 }
 0x103   :  { %v372_v56 = vpop.xlane.xlu1 %371 }
 0x104   :  { %v560_v32 = vmul.f32 0.00390625, %v372_v56  ;;  %v369_v38 = vpop.xlane.xlu0 %368 }
 0x105   :  { %v559_v29 = vmul.f32 0.00390625, %v369_v38  ;;  %v2585_v38 = vmul.f32 0.00390625, %v2373_v46  ;;  %v2613_v46 = vmul.f32 %v2567_v45, %v2567_v45  ;;  %v3751_v45 = vsub.f32 %v3631_v3, %v2118_v16 }
 0x106   :  { %v656_v56 = vsub.f32 %v560_v32, %v2185_v60  ;;  %v2605_v60 = vmul.f32 0.00390625, %v2408_v55 }
 0x107   :  { %3735 = vst [vmem:[#allocation139_spill] sm:$0xff] %v2585_v38  ;;  %v655_v26 = vsub.f32 %v559_v29, %v2159_v17  ;;  %v378_v50 = vpop.xlane.xlu1 %377  ;;  %v2600_v17 = vmul.f32 %v2562_v63, %v2562_v63 }
 0x108   :  { %v704_v34 = vmax.f32 %v656_v56, 0.0  ;;  %v562_v33 = vmul.f32 0.00390625, %v378_v50  ;;  %v375_v2 = vpop.xlane.xlu0 %374  ;;  %3740 = vst [vmem:[#allocation140_spill] sm:$0xff] %v2605_v60 }
 0x109   :  { %v703_v42 = vmax.f32 %v655_v26, 0.0  ;;  %v561_v27 = vmul.f32 0.00390625, %v375_v2 }
 0x10a   :  { %v752_v44 = vadd.f32 1e-12, %v704_v34  ;;  %v658_v56 = vsub.f32 %v562_v33, %v2172_v23 }
 0x10b   :  { %v751_v32 = vadd.f32 1e-12, %v703_v42  ;;  %v657_v26 = vsub.f32 %v561_v27, %v2148_v53  ;;  %v384_v2 = vpop.xlane.xlu1 %383  ;;  %v2619_v42 = vmul.f32 %v2585_v38, %v2585_v38 }
 0x10c   :  { %1370 = vrsqrt.f32 %v752_v44  ;;  %v706_v55 = vmax.f32 %v658_v56, 0.0  ;;  %v564_v29 = vmul.f32 0.00390625, %v384_v2  ;;  %v381_v34 = vpop.xlane.xlu0 %380 }
 0x10d   :  { %1372 = vrsqrt.f32 %v751_v32  ;;  %v705_v23 = vmax.f32 %v657_v26, 0.0  ;;  %v563_v33 = vmul.f32 0.00390625, %v381_v34  ;;  %v2632_v34 = vmul.f32 %v2605_v60, %v2605_v60 }
 0x10e   :  { %v754_v50 = vadd.f32 1e-12, %v706_v55  ;;  %v660_v20 = vsub.f32 %v564_v29, %v2196_v0  ;;  %v2638_v0 = vmul.f32 0.00390625, %v2469_v58 }
 0x10f   :  { %v753_v2 = vadd.f32 1e-12, %v705_v23  ;;  %v659_v32 = vsub.f32 %v563_v33, %v2207_v1  ;;  %v390_v26 = vpop.xlane.xlu1 %389  ;;  %v2641_v1 = vmul.f32 0.00390625, %v2504_v24  ;;  %v2644_v33 = vmul.f32 0.00390625, %v2517_v6 }
 0x110   :  { %1374 = vrsqrt.f32 %v754_v50  ;;  %v708_v39 = vmax.f32 %v660_v20, 0.0  ;;  %v566_v53 = vmul.f32 0.00390625, %v390_v26  ;;  %v387_v55 = vpop.xlane.xlu0 %386  ;;  %3745 = vst [vmem:[#allocation141_spill] sm:$0xff] %v2638_v0  ;;  %v2656_v6 = vmul.f32 %v2635_v7, %v2635_v7 }
 0x111   :  { %1376 = vrsqrt.f32 %v753_v2  ;;  %v707_v29 = vmax.f32 %v659_v32, 0.0  ;;  %v565_v23 = vmul.f32 0.00390625, %v387_v55  ;;  %3746 = vst [vmem:[#allocation142_spill] sm:$0xff] %v2641_v1  ;;  %3747 = vst [vmem:[#allocation143_spill] sm:$0xff] %v2644_v33  ;;  %v2652_v2 = vmul.f32 %v2624_v8, %v2624_v8 }
 0x112   :  { %v756_v56 = vadd.f32 1e-12, %v708_v39  ;;  %v662_v51 = vsub.f32 %v566_v53, %v2220_v13  ;;  %v2660_v39 = vmul.f32 %v2638_v0, %v2638_v0 }
 0x113   :  { %v755_v26 = vadd.f32 1e-12, %v707_v29  ;;  %v661_v44 = vsub.f32 %v565_v23, %v2233_v54  ;;  %v396_v58 = vpop.xlane.xlu1 %395 }
 0x114   :  { %1378 = vrsqrt.f32 %v756_v56  ;;  %v710_v24 = vmax.f32 %v662_v51, 0.0  ;;  %v568_v32 = vmul.f32 0.00390625, %v396_v58  ;;  %v393_v55 = vpop.xlane.xlu0 %392  ;;  %v2665_v56 = vmul.f32 %v2641_v1, %v2641_v1 }
 0x115   :  { %1380 = vrsqrt.f32 %v755_v26  ;;  %v709_v13 = vmax.f32 %v661_v44, 0.0  ;;  %v567_v53 = vmul.f32 0.00390625, %v393_v55  ;;  %v2669_v51 = vmul.f32 %v2644_v33, %v2644_v33  ;;  %v3749_v26 = vld [vmem:[#allocation99_spill] sm:$0xff] }
 0x116   :  { %v1371_v54 = vpop.eup %1370  ;;  %v758_v29 = vadd.f32 1e-12, %v710_v24  ;;  %v664_v23 = vsub.f32 %v568_v32, %v2244_v19  ;;  %v3750_v33 = vsub.f32 %v3630_v62, %v2118_v16 }
 0x117   :  { %v1373_v58 = vpop.eup %1372  ;;  %v956_v44 = vmul.f32 %v1371_v54, %v3749_v26  ;;  %v957_v55 = vmul.f32 %v1371_v54, %v2124_v11  ;;  %v757_v20 = vadd.f32 1e-12, %v709_v13  ;;  %v663_v50 = vsub.f32 %v567_v53, %v2255_v22  ;;  %v402_v60 = vpop.xlane.xlu1 %401 }
 0x118   :  { %v954_v24 = vmul.f32 %v1373_v58, %v3749_v26  ;;  %v955_v19 = vmul.f32 %v1373_v58, %v2124_v11  ;;  %1382 = vrsqrt.f32 %v758_v29  ;;  %v712_v32 = vmax.f32 %v664_v23, 0.0  ;;  %v399_v27 = vpop.xlane.xlu0 %398 }
 0x119   :  { %v1052_v38 = vmul.f32 %v956_v44, %v3750_v33  ;;  %v1053_v63 = vmul.f32 %v957_v55, %v3751_v45  ;;  %1384 = vrsqrt.f32 %v757_v20  ;;  %v711_v13 = vmax.f32 %v663_v50, 0.0  ;;  %v3756_v44 = vld [vmem:[#allocation11_spill] sm:$0xff] }
 0x11a   :  { %v1375_v54 = vpop.eup %1374  ;;  %v3752_v22 = vsub.f32 %v3629_v28, %v2112_v59  ;;  %v3753_v29 = vsub.f32 %v1570_v4, %v2112_v59  ;;  %v760_v58 = vadd.f32 1e-12, %v712_v32  ;;  %v570_v1 = vmul.f32 0.00390625, %v402_v60 }
 0x11b   :  { %v1377_v0 = vpop.eup %1376  ;;  %v1159_v62 = vadd.f32 %v2126_v9, %v1052_v38  ;;  %v1160_v33 = vadd.f32 %v2137_v10, %v1053_v63  ;;  %v960_v3 = vmul.f32 %v1375_v54, %v3749_v26  ;;  %v961_v16 = vmul.f32 %v1375_v54, %v2124_v11  ;;  %v408_v45 = vpop.xlane.xlu1 %407  ;;  %v3754_v38 = vld [vmem:[#allocation97_spill] sm:$0xff]  ;;  %v3758_v54 = vld [vmem:[#allocation8_spill] sm:$0xff] }
 0x11c   :  { %v1050_v53 = vmul.f32 %v954_v24, %v3752_v22  ;;  %v1051_v23 = vmul.f32 %v955_v19, %v3753_v29  ;;  %v958_v20 = vmul.f32 %v1377_v0, %v3749_v26  ;;  %v959_v4 = vmul.f32 %v1377_v0, %v2124_v11  ;;  %v405_v59 = vpop.xlane.xlu0 %404  ;;  %v3759_v22 = vld [vmem:[#allocation95_spill] sm:$0xff]  ;;  %v3761_v29 = vld [vmem:[#allocation9_spill] sm:$0xff] }
 0x11d   :  { %1255 = vst [vmem:[#allocation5 + $0x10] sm:$0xff] %v1159_v62  ;;  %1256 = vst [vmem:[#allocation5 + $0x18] sm:$0xff] %v1160_v33  ;;  %v3755_v60 = vsub.f32 %v1572_v5, %v3754_v38  ;;  %v3757_v55 = vsub.f32 %v3756_v44, %v3754_v38  ;;  %1386 = vrsqrt.f32 %v760_v58  ;;  %v759_v19 = vadd.f32 1e-12, %v711_v13  ;;  %v3765_v44 = vld [vmem:[#allocation15_spill] sm:$0xff] }
 0x11e   :  { %v1157_v50 = vadd.f32 %v2126_v9, %v1050_v53  ;;  %v1158_v28 = vadd.f32 %v2137_v10, %v1051_v23  ;;  %v1379_v32 = vpop.eup %1378  ;;  %v3760_v53 = vsub.f32 %v3758_v54, %v3759_v22  ;;  %v3762_v23 = vsub.f32 %v3761_v29, %v3759_v22 }
 0x11f   :  { %v1056_v63 = vmul.f32 %v960_v3, %v3755_v60  ;;  %v1057_v24 = vmul.f32 %v961_v16, %v3757_v55  ;;  %v666_v5 = vsub.f32 %v570_v1, %v2268_v25  ;;  %v569_v33 = vmul.f32 0.00390625, %v399_v27  ;;  %v1381_v3 = vpop.eup %1380  ;;  %v3763_v27 = vld [vmem:[#allocation14_spill] sm:$0xff] }
 0x120   :  { %1253 = vst [vmem:[#allocation5] sm:$0xff] %v1157_v50  ;;  %1254 = vst [vmem:[#allocation5 + $0x8] sm:$0xff] %v1158_v28  ;;  %v1054_v0 = vmul.f32 %v958_v20, %v3760_v53  ;;  %v1055_v62 = vmul.f32 %v959_v4, %v3762_v23  ;;  %v964_v13 = vmul.f32 %v1379_v32, %v3749_v26  ;;  %v414_v50 = vpop.xlane.xlu1 %413  ;;  %v411_v25 = vpop.xlane.xlu0 %410  ;;  %1388 = vrsqrt.f32 %v759_v19 }
 0x121   :  { %v1163_v38 = vadd.f32 %v2126_v9, %v1056_v63  ;;  %v1164_v58 = vadd.f32 %v2137_v10, %v1057_v24  ;;  %v965_v16 = vmul.f32 %v1379_v32, %v2124_v11  ;;  %v962_v60 = vmul.f32 %v1381_v3, %v3749_v26 }
 0x122   :  { %v1161_v28 = vadd.f32 %v2126_v9, %v1054_v0  ;;  %v1162_v20 = vadd.f32 %v2137_v10, %v1055_v62  ;;  %v963_v4 = vmul.f32 %v1381_v3, %v2124_v11  ;;  %v3764_v1 = vsub.f32 %v3763_v27, %v2133_v52  ;;  %v1383_v54 = vpop.eup %1382  ;;  %v3768_v0 = vld [vmem:[#allocation16_spill] sm:$0xff] }
 0x123   :  { %1259 = vst [vmem:[#allocation5 + $0x30] sm:$0xff] %v1163_v38  ;;  %1260 = vst [vmem:[#allocation5 + $0x38] sm:$0xff] %v1164_v58  ;;  %v3766_v55 = vsub.f32 %v3765_v44, %v2133_v52  ;;  %v714_v32 = vmax.f32 %v666_v5, 0.0  ;;  %v3767_v22 = vsub.f32 %v1590_v14, %v2144_v35  ;;  %v3769_v29 = vsub.f32 %v3768_v0, %v2144_v35  ;;  %v1385_v38 = vpop.eup %1384 }
 0x124   :  { %v1060_v63 = vmul.f32 %v964_v13, %v3764_v1  ;;  %1257 = vst [vmem:[#allocation5 + $0x20] sm:$0xff] %v1161_v28  ;;  %1258 = vst [vmem:[#allocation5 + $0x28] sm:$0xff] %v1162_v20  ;;  %v665_v62 = vsub.f32 %v569_v33, %v2281_v48  ;;  %v572_v3 = vmul.f32 0.00390625, %v408_v45  ;;  %v968_v5 = vmul.f32 %v1383_v54, %v3749_v26  ;;  %v420_v13 = vpop.xlane.xlu1 %419  ;;  %v417_v48 = vpop.xlane.xlu0 %416  ;;  %v3771_v20 = vld [vmem:[#allocation17_spill] sm:$0xff] }
 0x125   :  { %v1061_v24 = vmul.f32 %v965_v16, %v3766_v55  ;;  %v1058_v53 = vmul.f32 %v962_v60, %v3767_v22  ;;  %v1059_v23 = vmul.f32 %v963_v4, %v3769_v29  ;;  %v969_v58 = vmul.f32 %v1383_v54, %v2124_v11 }
 0x126   :  { %v1167_v52 = vadd.f32 %v2126_v9, %v1060_v63  ;;  %v966_v35 = vmul.f32 %v1385_v38, %v3749_v26  ;;  %v967_v28 = vmul.f32 %v1385_v38, %v2124_v11  ;;  %v3770_v45 = vsub.f32 %v1598_v18, %v2155_v47  ;;  %v3773_v63 = vld [vmem:[#allocation18_spill] sm:$0xff] }
 0x127   :  { %v1168_v19 = vadd.f32 %v2137_v10, %v1061_v24  ;;  %v1165_v14 = vadd.f32 %v2126_v9, %v1058_v53  ;;  %v1166_v16 = vadd.f32 %v2137_v10, %v1059_v23  ;;  %v3772_v60 = vsub.f32 %v3771_v20, %v2155_v47  ;;  %v3775_v24 = vld [vmem:[#allocation19_spill] sm:$0xff]  ;;  %v1387_v0 = vpop.eup %1386 }
 0x128   :  { %1263 = vst [vmem:[#allocation5 + $0x50] sm:$0xff] %v1167_v52  ;;  %v1064_v33 = vmul.f32 %v968_v5, %v3770_v45  ;;  %v762_v27 = vadd.f32 1e-12, %v714_v32  ;;  %v713_v1 = vmax.f32 %v665_v62, 0.0  ;;  %v3774_v44 = vsub.f32 %v3773_v63, %v2166_v49  ;;  %v426_v23 = vpop.xlane.xlu1 %425  ;;  %v3777_v5 = vld [vmem:[#allocation20_spill] sm:$0xff] }
 0x129   :  { %1264 = vst [vmem:[#allocation5 + $0x58] sm:$0xff] %v1168_v19  ;;  %v1065_v4 = vmul.f32 %v969_v58, %v3772_v60  ;;  %1261 = vst [vmem:[#allocation5 + $0x40] sm:$0xff] %v1165_v14  ;;  %v3776_v54 = vsub.f32 %v3775_v24, %v2166_v49  ;;  %v668_v53 = vsub.f32 %v572_v3, %v2292_v31  ;;  %v571_v18 = vmul.f32 0.00390625, %v405_v59  ;;  %v423_v19 = vpop.xlane.xlu0 %422 }
 0x12a   :  { %1262 = vst [vmem:[#allocation5 + $0x48] sm:$0xff] %v1166_v16  ;;  %v1062_v55 = vmul.f32 %v966_v35, %v3774_v44  ;;  %v1171_v29 = vadd.f32 %v2126_v9, %v1064_v33  ;;  %1390 = vrsqrt.f32 %v762_v27  ;;  %v761_v32 = vadd.f32 1e-12, %v713_v1  ;;  %v3779_v16 = vld [vmem:[#allocation21_spill] sm:$0xff]  ;;  %v1389_v20 = vpop.eup %1388 }
 0x12b   :  { %v1063_v22 = vmul.f32 %v967_v28, %v3776_v54  ;;  %v1172_v47 = vadd.f32 %v2137_v10, %v1065_v4  ;;  %v972_v52 = vmul.f32 %v1387_v0, %v3749_v26  ;;  %v973_v49 = vmul.f32 %v1387_v0, %v2124_v11  ;;  %v3781_v54 = vld [vmem:[#allocation22_spill] sm:$0xff] }
 0x12c   :  { %v1169_v62 = vadd.f32 %v2126_v9, %v1062_v55  ;;  %1267 = vst [vmem:[#allocation5 + $0x70] sm:$0xff] %v1171_v29  ;;  %1392 = vrsqrt.f32 %v761_v32  ;;  %v716_v31 = vmax.f32 %v668_v53, 0.0  ;;  %v667_v59 = vsub.f32 %v571_v18, %v2303_v21  ;;  %v432_v21 = vpop.xlane.xlu1 %431  ;;  %v3784_v53 = vld [vmem:[#allocation23_spill] sm:$0xff]  ;;  %v3786_v29 = vld [vmem:[#allocation110_spill] sm:$0xff]  ;;  %v3787_v32 = vld [vmem:[#allocation112_spill] sm:$0xff] }
 0x12d   :  { %v1170_v38 = vadd.f32 %v2137_v10, %v1063_v22  ;;  %1268 = vst [vmem:[#allocation5 + $0x78] sm:$0xff] %v1172_v47  ;;  %v574_v3 = vmul.f32 0.00390625, %v414_v50  ;;  %v3778_v58 = vsub.f32 %v3777_v5, %v2179_v41  ;;  %v3780_v35 = vsub.f32 %v3779_v16, %v2179_v41  ;;  %v429_v24 = vpop.xlane.xlu0 %428  ;;  %v3788_v16 = vld [vmem:[#allocation114_spill] sm:$0xff] }
 0x12e   :  { %1265 = vst [vmem:[#allocation5 + $0x60] sm:$0xff] %v1169_v62  ;;  %v573_v45 = vmul.f32 0.00390625, %v411_v25  ;;  %v576_v33 = vmul.f32 0.00390625, %v420_v13  ;;  %v764_v60 = vadd.f32 1e-12, %v716_v31  ;;  %v715_v4 = vmax.f32 %v667_v59, 0.0 }
 0x12f   :  { %1266 = vst [vmem:[#allocation5 + $0x68] sm:$0xff] %v1170_v38  ;;  %v1068_v14 = vmul.f32 %v972_v52, %v3778_v58  ;;  %v1069_v28 = vmul.f32 %v973_v49, %v3780_v35  ;;  %v670_v27 = vsub.f32 %v574_v3, %v2316_v36  ;;  %v575_v1 = vmul.f32 0.00390625, %v417_v48  ;;  %v3782_v36 = vld [vmem:[#allocation10_spill] sm:$0xff] }
 0x130   :  { %v970_v44 = vmul.f32 %v1389_v20, %v3749_v26  ;;  %v971_v55 = vmul.f32 %v1389_v20, %v2124_v11  ;;  %1394 = vrsqrt.f32 %v764_v60  ;;  %v763_v41 = vadd.f32 1e-12, %v715_v4  ;;  %v438_v5 = vpop.xlane.xlu1 %437 }
 0x131   :  { %v1175_v50 = vadd.f32 %v2126_v9, %v1068_v14  ;;  %v1176_v63 = vadd.f32 %v2137_v10, %v1069_v28  ;;  %v718_v25 = vmax.f32 %v670_v27, 0.0  ;;  %v669_v13 = vsub.f32 %v573_v45, %v2329_v43  ;;  %v435_v60 = vpop.xlane.xlu0 %434 }
 0x132   :  { %v3783_v48 = vsub.f32 %v3781_v54, %v3782_v36  ;;  %v3785_v18 = vsub.f32 %v3784_v53, %v3782_v36  ;;  %v672_v47 = vsub.f32 %v576_v33, %v3786_v29  ;;  %v671_v62 = vsub.f32 %v575_v1, %v3787_v32  ;;  %v3789_v1 = vld [vmem:[#allocation116_spill] sm:$0xff]  ;;  %v3797_v32 = vld [vmem:[#allocation13_spill] sm:$0xff] }
 0x133   :  { %1271 = vst [vmem:[#allocation5 + $0x90] sm:$0xff] %v1175_v50  ;;  %1272 = vst [vmem:[#allocation5 + $0x98] sm:$0xff] %v1176_v63  ;;  %1396 = vrsqrt.f32 %v763_v41  ;;  %v766_v38 = vadd.f32 1e-12, %v718_v25  ;;  %v717_v52 = vmax.f32 %v669_v13, 0.0  ;;  %v578_v49 = vmul.f32 0.00390625, %v426_v23 }
 0x134   :  { %v1066_v22 = vmul.f32 %v970_v44, %v3783_v48  ;;  %v1067_v0 = vmul.f32 %v971_v55, %v3785_v18  ;;  %v720_v59 = vmax.f32 %v672_v47, 0.0  ;;  %v719_v3 = vmax.f32 %v671_v62, 0.0  ;;  %v1391_v58 = vpop.eup %1390  ;;  %v3790_v44 = vld [vmem:[#allocation24_spill] sm:$0xff]  ;;  %v3795_v18 = vld [vmem:[#allocation117_spill] sm:$0xff]  ;;  %v3796_v47 = vld [vmem:[#allocation26_spill] sm:$0xff] }
 0x135   :  { %1398 = vrsqrt.f32 %v766_v38  ;;  %v765_v14 = vadd.f32 1e-12, %v717_v52  ;;  %v674_v35 = vsub.f32 %v578_v49, %v3788_v16  ;;  %v577_v28 = vmul.f32 0.00390625, %v423_v19  ;;  %v3791_v55 = vld [vmem:[#allocation12_spill] sm:$0xff]  ;;  %v3793_v19 = vld [vmem:[#allocation25_spill] sm:$0xff]  ;;  %v3799_v52 = vld [vmem:[#allocation27_spill] sm:$0xff] }
 0x136   :  { %v1173_v43 = vadd.f32 %v2126_v9, %v1066_v22  ;;  %v1174_v31 = vadd.f32 %v2137_v10, %v1067_v0  ;;  %v976_v45 = vmul.f32 %v1391_v58, %v3749_v26  ;;  %v977_v33 = vmul.f32 %v1391_v58, %v2124_v11  ;;  %v1393_v4 = vpop.eup %1392 }
 0x137   :  { %v768_v23 = vadd.f32 1e-12, %v720_v59  ;;  %v767_v20 = vadd.f32 1e-12, %v719_v3  ;;  %1400 = vrsqrt.f32 %v765_v14  ;;  %v722_v27 = vmax.f32 %v674_v35, 0.0 }
 0x138   :  { %1269 = vst [vmem:[#allocation5 + $0x80] sm:$0xff] %v1173_v43  ;;  %1270 = vst [vmem:[#allocation5 + $0x88] sm:$0xff] %v1174_v31  ;;  %v673_v50 = vsub.f32 %v577_v28, %v3789_v1  ;;  %v580_v63 = vmul.f32 0.00390625, %v432_v21  ;;  %v3792_v41 = vsub.f32 %v3790_v44, %v3791_v55  ;;  %v3794_v13 = vsub.f32 %v3793_v19, %v3791_v55  ;;  %v2801_v31 = vpop.xlane.xlu1 %443  ;;  %v3805_v55 = vld [vmem:[#allocation29_spill] sm:$0xff] }
 0x139   :  { %v974_v36 = vmul.f32 %v1393_v4, %v3749_v26  ;;  %v975_v48 = vmul.f32 %v1393_v4, %v2124_v11  ;;  %1402 = vrsqrt.f32 %v768_v23  ;;  %v770_v22 = vadd.f32 1e-12, %v722_v27  ;;  %v3801_v27 = vld [vmem:[#allocation118_spill] sm:$0xff] }
 0x13a   :  { %v1072_v25 = vmul.f32 %v976_v45, %v3792_v41  ;;  %v1073_v54 = vmul.f32 %v977_v33, %v3794_v13  ;;  %v721_v53 = vmax.f32 %v673_v50, 0.0  ;;  %v676_v0 = vsub.f32 %v580_v63, %v3795_v18  ;;  %v1395_v59 = vpop.eup %1394  ;;  %v2807_v33 = vpop.xlane.xlu0 %440  ;;  %v3803_v50 = vld [vmem:[#allocation100_spill] sm:$0xff] }
 0x13b   :  { %v3798_v62 = vsub.f32 %v3796_v47, %v3797_v32  ;;  %v3800_v49 = vsub.f32 %v3799_v52, %v3797_v32  ;;  %1404 = vrsqrt.f32 %v767_v20  ;;  %v579_v14 = vmul.f32 0.00390625, %v429_v24  ;;  %v3802_v24 = vld [vmem:[#allocation28_spill] sm:$0xff]  ;;  %v3811_v32 = vld [vmem:[#allocation31_spill] sm:$0xff] }
 0x13c   :  { %v1179_v29 = vadd.f32 %v2126_v9, %v1072_v25  ;;  %v1180_v21 = vadd.f32 %v2137_v10, %v1073_v54  ;;  %v769_v3 = vadd.f32 1e-12, %v721_v53  ;;  %v724_v58 = vmax.f32 %v676_v0, 0.0  ;;  %v3808_v0 = vld [vmem:[#allocation30_spill] sm:$0xff]  ;;  %v2827_v52 = vpop.xlane.xlu1 %449 }
 0x13d   :  { %v1070_v38 = vmul.f32 %v974_v36, %v3798_v62  ;;  %v1071_v43 = vmul.f32 %v975_v48, %v3800_v49  ;;  %v980_v28 = vmul.f32 %v1395_v59, %v3749_v26  ;;  %v981_v45 = vmul.f32 %v1395_v59, %v2124_v11  ;;  %v1397_v23 = vpop.eup %1396  ;;  %v3807_v48 = vld [vmem:[#allocation119_spill] sm:$0xff] }
 0x13e   :  { %1275 = vst [vmem:[#allocation5 + $0xb0] sm:$0xff] %v1179_v29  ;;  %1276 = vst [vmem:[#allocation5 + $0xb8] sm:$0xff] %v1180_v21  ;;  %1406 = vrsqrt.f32 %v770_v22  ;;  %v772_v4 = vadd.f32 1e-12, %v724_v58  ;;  %v675_v20 = vsub.f32 %v579_v14, %v3801_v27  ;;  %v582_v1 = vmul.f32 0.00390625, %v438_v5  ;;  %v3809_v29 = vld [vmem:[#allocation101_spill] sm:$0xff] }
 0x13f   :  { %v1177_v16 = vadd.f32 %v2126_v9, %v1070_v38  ;;  %v1178_v35 = vadd.f32 %v2137_v10, %v1071_v43  ;;  %v3804_v63 = vsub.f32 %v3802_v24, %v3803_v50  ;;  %v3806_v41 = vsub.f32 %v3805_v55, %v3803_v50  ;;  %v1399_v54 = vpop.eup %1398 }
 0x140   :  { %v978_v19 = vmul.f32 %v1397_v23, %v3749_v26  ;;  %v979_v13 = vmul.f32 %v1397_v23, %v2124_v11  ;;  %1408 = vrsqrt.f32 %v769_v3  ;;  %v723_v36 = vmax.f32 %v675_v20, 0.0  ;;  %v3814_v23 = vld [vmem:[#allocation102_spill] sm:$0xff] }
 0x141   :  { %1273 = vst [vmem:[#allocation5 + $0xa0] sm:$0xff] %v1177_v16  ;;  %1274 = vst [vmem:[#allocation5 + $0xa8] sm:$0xff] %v1178_v35  ;;  %v1076_v44 = vmul.f32 %v980_v28, %v3804_v63  ;;  %v1077_v25 = vmul.f32 %v981_v45, %v3806_v41  ;;  %v678_v22 = vsub.f32 %v582_v1, %v3807_v48  ;;  %v581_v5 = vmul.f32 0.00390625, %v435_v60  ;;  %v1401_v49 = vpop.eup %1400  ;;  %v2835_v35 = vpop.xlane.xlu0 %446  ;;  %v3813_v45 = vld [vmem:[#allocation32_spill] sm:$0xff]  ;;  %v3816_v1 = vld [vmem:[#allocation33_spill] sm:$0xff] }
 0x142   :  { %v3810_v21 = vsub.f32 %v3808_v0, %v3809_v29  ;;  %v3812_v62 = vsub.f32 %v3811_v32, %v3809_v29  ;;  %v984_v43 = vmul.f32 %v1399_v54, %v3749_v26  ;;  %v985_v59 = vmul.f32 %v1399_v54, %v2124_v11  ;;  %v3818_v63 = vld [vmem:[#allocation34_spill] sm:$0xff]  ;;  %v3823_v0 = vld [vmem:[#allocation120_spill] sm:$0xff] }
 0x143   :  { %v1183_v53 = vadd.f32 %v2126_v9, %v1076_v44  ;;  %v1184_v18 = vadd.f32 %v2137_v10, %v1077_v25  ;;  %1410 = vrsqrt.f32 %v772_v4  ;;  %v771_v60 = vadd.f32 1e-12, %v723_v36  ;;  %v1403_v28 = vpop.eup %1402  ;;  %v3819_v44 = vld [vmem:[#allocation103_spill] sm:$0xff]  ;;  %v3824_v32 = vld [vmem:[#allocation36_spill] sm:$0xff] }
 0x144   :  { %v1074_v47 = vmul.f32 %v978_v19, %v3810_v21  ;;  %v1075_v38 = vmul.f32 %v979_v13, %v3812_v62  ;;  %v982_v14 = vmul.f32 %v1401_v49, %v3749_v26  ;;  %v983_v16 = vmul.f32 %v1401_v49, %v2124_v11  ;;  %v3821_v25 = vld [vmem:[#allocation35_spill] sm:$0xff]  ;;  %v3825_v62 = vld [vmem:[#allocation104_spill] sm:$0xff] }
 0x145   :  { %1279 = vst [vmem:[#allocation5 + $0xd0] sm:$0xff] %v1183_v53  ;;  %1280 = vst [vmem:[#allocation5 + $0xd8] sm:$0xff] %v1184_v18  ;;  %v3815_v27 = vsub.f32 %v3813_v45, %v3814_v23  ;;  %v3817_v4 = vsub.f32 %v3816_v1, %v3814_v23  ;;  %1412 = vrsqrt.f32 %v771_v60  ;;  %v726_v50 = vmax.f32 %v678_v22, 0.0  ;;  %v1405_v48 = vpop.eup %1404 }
 0x146   :  { %v1181_v3 = vadd.f32 %v2126_v9, %v1074_v47  ;;  %v1182_v58 = vadd.f32 %v2137_v10, %v1075_v38  ;;  %v3820_v55 = vsub.f32 %v3818_v63, %v3819_v44  ;;  %v3822_v19 = vsub.f32 %v3821_v25, %v3819_v44  ;;  %v3832_v44 = vld [vmem:[#allocation39_spill] sm:$0xff] }
 0x147   :  { %v1080_v20 = vmul.f32 %v984_v43, %v3815_v27  ;;  %v1081_v24 = vmul.f32 %v985_v59, %v3817_v4  ;;  %v988_v54 = vmul.f32 %v1403_v28, %v3749_v26  ;;  %v989_v36 = vmul.f32 %v1403_v28, %v2124_v11  ;;  %v3827_v43 = vld [vmem:[#allocation37_spill] sm:$0xff]  ;;  %v3829_v4 = vld [vmem:[#allocation38_spill] sm:$0xff] }
 0x148   :  { %1277 = vst [vmem:[#allocation5 + $0xc0] sm:$0xff] %v1181_v3  ;;  %1278 = vst [vmem:[#allocation5 + $0xc8] sm:$0xff] %v1182_v58  ;;  %v1078_v41 = vmul.f32 %v982_v14, %v3820_v55  ;;  %v1079_v13 = vmul.f32 %v983_v16, %v3822_v19  ;;  %v774_v22 = vadd.f32 1e-12, %v726_v50  ;;  %v677_v29 = vsub.f32 %v581_v5, %v3823_v0  ;;  %v2862_v3 = vpop.xlane.xlu1 %455  ;;  %v1407_v58 = vpop.eup %1406 }
 0x149   :  { %v1187_v53 = vadd.f32 %v2126_v9, %v1080_v20  ;;  %v1188_v18 = vadd.f32 %v2137_v10, %v1081_v24  ;;  %v3826_v38 = vsub.f32 %v3824_v32, %v3825_v62  ;;  %v3828_v59 = vsub.f32 %v3827_v43, %v3825_v62  ;;  %v2870_v20 = vpop.xlane.xlu0 %452  ;;  %v3830_v24 = vld [vmem:[#allocation105_spill] sm:$0xff]  ;;  %v3840_v43 = vld [vmem:[#allocation107_spill] sm:$0xff] }
 0x14a   :  { %v1185_v21 = vadd.f32 %v2126_v9, %v1078_v41  ;;  %v1186_v47 = vadd.f32 %v2137_v10, %v1079_v13  ;;  %v986_v14 = vmul.f32 %v1405_v48, %v3749_v26  ;;  %v987_v5 = vmul.f32 %v1405_v48, %v2124_v11  ;;  %v1409_v1 = vpop.eup %1408  ;;  %v3834_v13 = vld [vmem:[#allocation40_spill] sm:$0xff] }
 0x14b   :  { %v1084_v49 = vmul.f32 %v988_v54, %v3826_v38  ;;  %v1085_v60 = vmul.f32 %v989_v36, %v3828_v59  ;;  %1283 = vst [vmem:[#allocation5 + $0xf0] sm:$0xff] %v1187_v53  ;;  %1284 = vst [vmem:[#allocation5 + $0xf8] sm:$0xff] %v1188_v18  ;;  %1414 = vrsqrt.f32 %v774_v22  ;;  %v725_v16 = vmax.f32 %v677_v29, 0.0  ;;  %v3835_v54 = vld [vmem:[#allocation106_spill] sm:$0xff]  ;;  %v3837_v53 = vld [vmem:[#allocation41_spill] sm:$0xff] }
 0x14c   :  { %1281 = vst [vmem:[#allocation5 + $0xe0] sm:$0xff] %v1185_v21  ;;  %1282 = vst [vmem:[#allocation5 + $0xe8] sm:$0xff] %v1186_v47  ;;  %v992_v23 = vmul.f32 %v1407_v58, %v3749_v26  ;;  %v993_v27 = vmul.f32 %v1407_v58, %v2124_v11  ;;  %v3831_v50 = vsub.f32 %v3829_v4, %v3830_v24  ;;  %v584_v19 = vmul.f32 0.00390625, %v2801_v31  ;;  %v3842_v58 = vld [vmem:[#allocation43_spill] sm:$0xff] }
 0x14d   :  { %v1191_v28 = vadd.f32 %v2126_v9, %v1084_v49  ;;  %v1192_v45 = vadd.f32 %v2137_v10, %v1085_v60  ;;  %v3833_v55 = vsub.f32 %v3832_v44, %v3830_v24  ;;  %v773_v25 = vadd.f32 1e-12, %v725_v16  ;;  %v1411_v21 = vpop.eup %1410  ;;  %v3839_v49 = vld [vmem:[#allocation42_spill] sm:$0xff]  ;;  %v462_v16 = vpop.xlane.xlu1 %461  ;;  %v3844_v44 = vld [vmem:[#allocation44_spill] sm:$0xff] }
 0x14e   :  { %v1082_v63 = vmul.f32 %v986_v14, %v3831_v50  ;;  %v3836_v36 = vsub.f32 %v3834_v13, %v3835_v54  ;;  %v3838_v18 = vsub.f32 %v3837_v53, %v3835_v54  ;;  %v990_v0 = vmul.f32 %v1409_v1, %v3749_v26  ;;  %v3850_v53 = vld [vmem:[#allocation109_spill] sm:$0xff] }
 0x14f   :  { %v1083_v41 = vmul.f32 %v987_v5, %v3833_v55  ;;  %1287 = vst [vmem:[#allocation5 + $0x110] sm:$0xff] %v1191_v28  ;;  %1288 = vst [vmem:[#allocation5 + $0x118] sm:$0xff] %v1192_v45  ;;  %v991_v29 = vmul.f32 %v1409_v1, %v2124_v11  ;;  %1416 = vrsqrt.f32 %v773_v25  ;;  %v680_v31 = vsub.f32 %v584_v19, %v2436_v37  ;;  %v1413_v28 = vpop.eup %1412  ;;  %v3845_v55 = vld [vmem:[#allocation108_spill] sm:$0xff]  ;;  %v3847_v19 = vld [vmem:[#allocation45_spill] sm:$0xff] }
 0x150   :  { %v1088_v48 = vmul.f32 %v992_v23, %v3836_v36  ;;  %v1089_v22 = vmul.f32 %v993_v27, %v3838_v18  ;;  %v1189_v47 = vadd.f32 %v2126_v9, %v1082_v63  ;;  %v3841_v59 = vsub.f32 %v3839_v49, %v3840_v43  ;;  %v459_v63 = vpop.xlane.xlu0 %458 }
 0x151   :  { %v1190_v32 = vadd.f32 %v2137_v10, %v1083_v41  ;;  %v3843_v14 = vsub.f32 %v3842_v58, %v3840_v43  ;;  %v996_v45 = vmul.f32 %v1411_v21, %v3749_v26  ;;  %v997_v37 = vmul.f32 %v1411_v21, %v2124_v11  ;;  %v468_v58 = vpop.xlane.xlu1 %467 }
 0x152   :  { %v1195_v62 = vadd.f32 %v2126_v9, %v1088_v48  ;;  %v1196_v38 = vadd.f32 %v2137_v10, %v1089_v22  ;;  %v1086_v60 = vmul.f32 %v990_v0, %v3841_v59  ;;  %1285 = vst [vmem:[#allocation5 + $0x100] sm:$0xff] %v1189_v47  ;;  %v728_v23 = vmax.f32 %v680_v31, 0.0  ;;  %v3849_v48 = vld [vmem:[#allocation46_spill] sm:$0xff]  ;;  %v3852_v0 = vld [vmem:[#allocation47_spill] sm:$0xff] }
 0x153   :  { %v1087_v5 = vmul.f32 %v991_v29, %v3843_v14  ;;  %1286 = vst [vmem:[#allocation5 + $0x108] sm:$0xff] %v1190_v32  ;;  %v583_v27 = vmul.f32 0.00390625, %v2807_v33  ;;  %v994_v24 = vmul.f32 %v1413_v28, %v3749_v26  ;;  %v995_v50 = vmul.f32 %v1413_v28, %v2124_v11 }
 0x154   :  { %1291 = vst [vmem:[#allocation5 + $0x130] sm:$0xff] %v1195_v62  ;;  %1292 = vst [vmem:[#allocation5 + $0x138] sm:$0xff] %v1196_v38  ;;  %v1193_v1 = vadd.f32 %v2126_v9, %v1086_v60  ;;  %v3846_v41 = vsub.f32 %v3844_v44, %v3845_v55  ;;  %v3848_v13 = vsub.f32 %v3847_v19, %v3845_v55  ;;  %v776_v33 = vadd.f32 1e-12, %v728_v23  ;;  %v3857_v23 = vld [vmem:[#allocation111_spill] sm:$0xff] }
 0x155   :  { %v1194_v4 = vadd.f32 %v2137_v10, %v1087_v5  ;;  %v679_v36 = vsub.f32 %v583_v27, %v2447_v15  ;;  %v3851_v18 = vsub.f32 %v3849_v48, %v3850_v53  ;;  %v3853_v29 = vsub.f32 %v3852_v0, %v3850_v53  ;;  %v1415_v31 = vpop.eup %1414  ;;  %v3855_v5 = vld [vmem:[#allocation124_spill] sm:$0xff]  ;;  %v3862_v0 = vld [vmem:[#allocation113_spill] sm:$0xff] }
 0x156   :  { %v1092_v25 = vmul.f32 %v996_v45, %v3846_v41  ;;  %v1093_v54 = vmul.f32 %v997_v37, %v3848_v13  ;;  %1289 = vst [vmem:[#allocation5 + $0x120] sm:$0xff] %v1193_v1  ;;  %v586_v47 = vmul.f32 0.00390625, %v2827_v52  ;;  %v585_v32 = vmul.f32 0.00390625, %v2835_v35  ;;  %v3854_v35 = vld [vmem:[#allocation122_spill] sm:$0xff]  ;;  %v3856_v37 = vld [vmem:[#allocation48_spill] sm:$0xff]  ;;  %v465_v41 = vpop.xlane.xlu0 %464 }
 0x157   :  { %1290 = vst [vmem:[#allocation5 + $0x128] sm:$0xff] %v1194_v4  ;;  %v1090_v22 = vmul.f32 %v994_v24, %v3851_v18  ;;  %v1091_v21 = vmul.f32 %v995_v50, %v3853_v29  ;;  %1418 = vrsqrt.f32 %v776_v33  ;;  %v727_v15 = vmax.f32 %v679_v36, 0.0  ;;  %v3859_v4 = vld [vmem:[#allocation49_spill] sm:$0xff] }
 0x158   :  { %v1199_v62 = vadd.f32 %v2126_v9, %v1092_v25  ;;  %v1200_v38 = vadd.f32 %v2137_v10, %v1093_v54  ;;  %v1000_v59 = vmul.f32 %v1415_v31, %v3749_v26  ;;  %v1001_v60 = vmul.f32 %v1415_v31, %v2124_v11  ;;  %v3866_v31 = vld [vmem:[#allocation128_spill] sm:$0xff] }
 0x159   :  { %v1197_v49 = vadd.f32 %v2126_v9, %v1090_v22  ;;  %v1198_v43 = vadd.f32 %v2137_v10, %v1091_v21  ;;  %v775_v52 = vadd.f32 1e-12, %v727_v15  ;;  %v682_v14 = vsub.f32 %v586_v47, %v3854_v35  ;;  %v1417_v25 = vpop.eup %1416  ;;  %v474_v15 = vpop.xlane.xlu1 %473 }
 0x15a   :  { %1295 = vst [vmem:[#allocation5 + $0x150] sm:$0xff] %v1199_v62  ;;  %1296 = vst [vmem:[#allocation5 + $0x158] sm:$0xff] %v1200_v38  ;;  %v681_v28 = vsub.f32 %v585_v32, %v3855_v5  ;;  %v588_v45 = vmul.f32 0.00390625, %v2862_v3  ;;  %v3858_v27 = vsub.f32 %v3856_v37, %v3857_v23  ;;  %v3860_v24 = vsub.f32 %v3859_v4, %v3857_v23  ;;  %v471_v35 = vpop.xlane.xlu0 %470 }
 0x15b   :  { %1293 = vst [vmem:[#allocation5 + $0x140] sm:$0xff] %v1197_v49  ;;  %1294 = vst [vmem:[#allocation5 + $0x148] sm:$0xff] %v1198_v43  ;;  %v587_v44 = vmul.f32 0.00390625, %v2870_v20  ;;  %v590_v55 = vmul.f32 0.00390625, %v462_v16  ;;  %1420 = vrsqrt.f32 %v775_v52  ;;  %v730_v19 = vmax.f32 %v682_v14, 0.0  ;;  %v3861_v16 = vld [vmem:[#allocation50_spill] sm:$0xff] }
 0x15c   :  { %v1096_v1 = vmul.f32 %v1000_v59, %v3858_v27  ;;  %v1097_v50 = vmul.f32 %v1001_v60, %v3860_v24  ;;  %v729_v13 = vmax.f32 %v681_v28, 0.0  ;;  %v684_v3 = vsub.f32 %v588_v45, %v2484_v57  ;;  %v3864_v57 = vld [vmem:[#allocation51_spill] sm:$0xff]  ;;  %v3867_v28 = vld [vmem:[#allocation130_spill] sm:$0xff] }
 0x15d   :  { %v998_v36 = vmul.f32 %v1417_v25, %v3749_v26  ;;  %v999_v48 = vmul.f32 %v1417_v25, %v2124_v11  ;;  %v778_v53 = vadd.f32 1e-12, %v730_v19  ;;  %v683_v20 = vsub.f32 %v587_v44, %v2495_v30  ;;  %v3869_v44 = vld [vmem:[#allocation115_spill] sm:$0xff]  ;;  %v3871_v19 = vld [vmem:[#allocation53_spill] sm:$0xff] }
 0x15e   :  { %v1203_v54 = vadd.f32 %v2126_v9, %v1096_v1  ;;  %v1204_v33 = vadd.f32 %v2137_v10, %v1097_v50  ;;  %v777_v18 = vadd.f32 1e-12, %v729_v13  ;;  %v732_v22 = vmax.f32 %v684_v3, 0.0  ;;  %v3868_v50 = vld [vmem:[#allocation52_spill] sm:$0xff]  ;;  %v3873_v3 = vld [vmem:[#allocation133_spill] sm:$0xff] }
 0x15f   :  { %v3863_v29 = vsub.f32 %v3861_v16, %v3862_v0  ;;  %v3865_v47 = vsub.f32 %v3864_v57, %v3862_v0  ;;  %v686_v62 = vsub.f32 %v590_v55, %v3866_v31  ;;  %v589_v38 = vmul.f32 0.00390625, %v459_v63  ;;  %v3875_v31 = vld [vmem:[#allocation54_spill] sm:$0xff] }
 0x160   :  { %1299 = vst [vmem:[#allocation5 + $0x170] sm:$0xff] %v1203_v54  ;;  %1300 = vst [vmem:[#allocation5 + $0x178] sm:$0xff] %v1204_v33  ;;  %1422 = vrsqrt.f32 %v778_v53  ;;  %v780_v49 = vadd.f32 1e-12, %v732_v22  ;;  %v731_v43 = vmax.f32 %v683_v20, 0.0  ;;  %v592_v59 = vmul.f32 0.00390625, %v468_v58  ;;  %v480_v33 = vpop.xlane.xlu1 %479 }
 0x161   :  { %v1094_v21 = vmul.f32 %v998_v36, %v3863_v29  ;;  %v1095_v32 = vmul.f32 %v999_v48, %v3865_v47  ;;  %1424 = vrsqrt.f32 %v777_v18  ;;  %v734_v52 = vmax.f32 %v686_v62, 0.0  ;;  %v1419_v14 = vpop.eup %1418  ;;  %v3876_v62 = vld [vmem:[#allocation91_spill] sm:$0xff] }
 0x162   :  { %1426 = vrsqrt.f32 %v780_v49  ;;  %v779_v5 = vadd.f32 1e-12, %v731_v43  ;;  %v685_v45 = vsub.f32 %v589_v38, %v3867_v28  ;;  %v688_v37 = vsub.f32 %v592_v59, %v2532_v40  ;;  %v3878_v49 = vld [vmem:[#allocation55_spill] sm:$0xff] }
 0x163   :  { %v1201_v30 = vadd.f32 %v2126_v9, %v1094_v21  ;;  %v1202_v60 = vadd.f32 %v2137_v10, %v1095_v32  ;;  %v1004_v63 = vmul.f32 %v1419_v14, %v3749_v26  ;;  %v1005_v58 = vmul.f32 %v1419_v14, %v2124_v11  ;;  %v477_v21 = vpop.xlane.xlu0 %476 }
 0x164   :  { %v782_v23 = vadd.f32 1e-12, %v734_v52  ;;  %v591_v27 = vmul.f32 0.00390625, %v465_v41  ;;  %1428 = vrsqrt.f32 %v779_v5  ;;  %v733_v1 = vmax.f32 %v685_v45, 0.0  ;;  %v3874_v41 = vld [vmem:[#allocation134_spill] sm:$0xff] }
 0x165   :  { %1297 = vst [vmem:[#allocation5 + $0x160] sm:$0xff] %v1201_v30  ;;  %1298 = vst [vmem:[#allocation5 + $0x168] sm:$0xff] %v1202_v60  ;;  %v736_v4 = vmax.f32 %v688_v37, 0.0  ;;  %v594_v24 = vmul.f32 0.00390625, %v474_v15  ;;  %v3870_v55 = vsub.f32 %v3868_v50, %v3869_v44  ;;  %v3872_v13 = vsub.f32 %v3871_v19, %v3869_v44  ;;  %v1421_v36 = vpop.eup %1420  ;;  %v3881_v50 = vld [vmem:[#allocation92_spill] sm:$0xff] }
 0x166   :  { %1430 = vrsqrt.f32 %v782_v23  ;;  %v687_v54 = vsub.f32 %v591_v27, %v3873_v3  ;;  %v781_v48 = vadd.f32 1e-12, %v733_v1  ;;  %v593_v22 = vmul.f32 0.00390625, %v471_v35 }
 0x167   :  { %v1100_v25 = vmul.f32 %v1004_v63, %v3870_v55  ;;  %v1101_v40 = vmul.f32 %v1005_v58, %v3872_v13  ;;  %v784_v53 = vadd.f32 1e-12, %v736_v4  ;;  %v690_v18 = vsub.f32 %v594_v24, %v3874_v41  ;;  %v2980_v58 = vpop.xlane.xlu1 %485  ;;  %v3880_v24 = vld [vmem:[#allocation56_spill] sm:$0xff] }
 0x168   :  { %v1002_v0 = vmul.f32 %v1421_v36, %v3749_v26  ;;  %v1003_v29 = vmul.f32 %v1421_v36, %v2124_v11  ;;  %1432 = vrsqrt.f32 %v781_v48  ;;  %v735_v57 = vmax.f32 %v687_v54, 0.0  ;;  %v2992_v54 = vpop.xlane.xlu0 %482  ;;  %v3885_v36 = vld [vmem:[#allocation58_spill] sm:$0xff]  ;;  %v3886_v48 = vld [vmem:[#allocation93_spill] sm:$0xff] }
 0x169   :  { %v1207_v20 = vadd.f32 %v2126_v9, %v1100_v25  ;;  %v1208_v16 = vadd.f32 %v2137_v10, %v1101_v40  ;;  %v738_v47 = vmax.f32 %v690_v18, 0.0  ;;  %v689_v32 = vsub.f32 %v593_v22, %v2555_v12  ;;  %v3883_v25 = vld [vmem:[#allocation57_spill] sm:$0xff]  ;;  %v3888_v18 = vld [vmem:[#allocation59_spill] sm:$0xff] }
 0x16a   :  { %v3877_v38 = vsub.f32 %v3875_v31, %v3876_v62  ;;  %v3879_v43 = vsub.f32 %v3878_v49, %v3876_v62  ;;  %1434 = vrsqrt.f32 %v784_v53  ;;  %v596_v30 = vmul.f32 0.00390625, %v480_v33  ;;  %v1423_v60 = vpop.eup %1422 }
 0x16b   :  { %1303 = vst [vmem:[#allocation5 + $0x190] sm:$0xff] %v1207_v20  ;;  %1304 = vst [vmem:[#allocation5 + $0x198] sm:$0xff] %v1208_v16  ;;  %v783_v52 = vadd.f32 1e-12, %v735_v57  ;;  %v786_v35 = vadd.f32 1e-12, %v738_v47  ;;  %v1425_v28 = vpop.eup %1424  ;;  %v1008_v37 = vmul.f32 %v1423_v60, %v3749_v26  ;;  %v1009_v63 = vmul.f32 %v1423_v60, %v2124_v11 }
 0x16c   :  { %v1098_v15 = vmul.f32 %v1002_v0, %v3877_v38  ;;  %v1099_v59 = vmul.f32 %v1003_v29, %v3879_v43  ;;  %v737_v14 = vmax.f32 %v689_v32, 0.0  ;;  %v2974_v5 = vmul.f32 0.00390625, %v477_v21  ;;  %v1427_v23 = vpop.eup %1426  ;;  %v3890_v16 = vld [vmem:[#allocation137_spill] sm:$0xff]  ;;  %v3891_v47 = vld [vmem:[#allocation60_spill] sm:$0xff]  ;;  %v3892_v32 = vld [vmem:[#allocation94_spill] sm:$0xff] }
 0x16d   :  { %v1006_v27 = vmul.f32 %v1425_v28, %v3749_v26  ;;  %v1007_v1 = vmul.f32 %v1425_v28, %v2124_v11  ;;  %1436 = vrsqrt.f32 %v783_v52  ;;  %v3882_v44 = vsub.f32 %v3880_v24, %v3881_v50  ;;  %v3894_v38 = vld [vmem:[#allocation61_spill] sm:$0xff] }
 0x16e   :  { %v1205_v12 = vadd.f32 %v2126_v9, %v1098_v15  ;;  %v1206_v45 = vadd.f32 %v2137_v10, %v1099_v59  ;;  %v785_v4 = vadd.f32 1e-12, %v737_v14  ;;  %v3884_v19 = vsub.f32 %v3883_v25, %v3881_v50  ;;  %v1429_v33 = vpop.eup %1428  ;;  %v3901_v25 = vld [vmem:[#allocation64_spill] sm:$0xff] }
 0x16f   :  { %v1104_v55 = vmul.f32 %v1008_v37, %v3882_v44  ;;  %v1012_v40 = vmul.f32 %v1427_v23, %v3749_v26  ;;  %v1013_v3 = vmul.f32 %v1427_v23, %v2124_v11  ;;  %v3887_v53 = vsub.f32 %v3885_v36, %v3886_v48  ;;  %v3896_v37 = vld [vmem:[#allocation62_spill] sm:$0xff] }
 0x170   :  { %1301 = vst [vmem:[#allocation5 + $0x180] sm:$0xff] %v1205_v12  ;;  %1302 = vst [vmem:[#allocation5 + $0x188] sm:$0xff] %v1206_v45  ;;  %v1105_v13 = vmul.f32 %v1009_v63, %v3884_v19  ;;  %v3889_v22 = vsub.f32 %v3888_v18, %v3886_v48  ;;  %1438 = vrsqrt.f32 %v786_v35  ;;  %v692_v0 = vsub.f32 %v596_v30, %v3890_v16  ;;  %v1431_v29 = vpop.eup %1430  ;;  %v492_v12 = vpop.xlane.xlu1 %491  ;;  %v3897_v63 = vld [vmem:[#allocation96_spill] sm:$0xff]  ;;  %v3902_v19 = vld [vmem:[#allocation98_spill] sm:$0xff] }
 0x171   :  { %v1102_v41 = vmul.f32 %v1006_v27, %v3887_v53  ;;  %v1211_v21 = vadd.f32 %v2126_v9, %v1104_v55  ;;  %v3893_v31 = vsub.f32 %v3891_v47, %v3892_v32  ;;  %v3895_v15 = vsub.f32 %v3894_v38, %v3892_v32  ;;  %v3909_v32 = vld [vmem:[#allocation67_spill] sm:$0xff] }
 0x172   :  { %v1103_v20 = vmul.f32 %v1007_v1, %v3889_v22  ;;  %v1212_v57 = vadd.f32 %v2137_v10, %v1105_v13  ;;  %v1010_v60 = vmul.f32 %v1429_v33, %v3749_v26  ;;  %v1011_v30 = vmul.f32 %v1429_v33, %v2124_v11  ;;  %v1433_v45 = vpop.eup %1432  ;;  %v3899_v1 = vld [vmem:[#allocation63_spill] sm:$0xff] }
 0x173   :  { %v1108_v62 = vmul.f32 %v1012_v40, %v3893_v31  ;;  %v1109_v49 = vmul.f32 %v1013_v3, %v3895_v15  ;;  %v1209_v43 = vadd.f32 %v2126_v9, %v1102_v41  ;;  %1307 = vst [vmem:[#allocation5 + $0x1b0] sm:$0xff] %v1211_v21  ;;  %v1016_v14 = vmul.f32 %v1431_v29, %v3749_v26  ;;  %v3904_v3 = vld [vmem:[#allocation65_spill] sm:$0xff]  ;;  %v489_v41 = vpop.xlane.xlu0 %488  ;;  %v3911_v15 = vld [vmem:[#allocation68_spill] sm:$0xff] }
 0x174   :  { %v1210_v59 = vadd.f32 %v2137_v10, %v1103_v20  ;;  %1308 = vst [vmem:[#allocation5 + $0x1b8] sm:$0xff] %v1212_v57  ;;  %v1017_v28 = vmul.f32 %v1431_v29, %v2124_v11  ;;  %v3898_v23 = vsub.f32 %v3896_v37, %v3897_v63  ;;  %v3900_v24 = vsub.f32 %v3899_v1, %v3897_v63  ;;  %v1435_v55 = vpop.eup %1434  ;;  %v3906_v29 = vld [vmem:[#allocation66_spill] sm:$0xff]  ;;  %v3907_v21 = vld [vmem:[#allocation121_spill] sm:$0xff] }
 0x175   :  { %v1215_v52 = vadd.f32 %v2126_v9, %v1108_v62  ;;  %v1216_v35 = vadd.f32 %v2137_v10, %v1109_v49  ;;  %1305 = vst [vmem:[#allocation5 + $0x1a0] sm:$0xff] %v1209_v43  ;;  %1440 = vrsqrt.f32 %v785_v4  ;;  %v740_v44 = vmax.f32 %v692_v0, 0.0  ;;  %v3912_v49 = vld [vmem:[#allocation123_spill] sm:$0xff] }
 0x176   :  { %1306 = vst [vmem:[#allocation5 + $0x1a8] sm:$0xff] %v1210_v59  ;;  %v1106_v27 = vmul.f32 %v1010_v60, %v3898_v23  ;;  %v1107_v50 = vmul.f32 %v1011_v30, %v3900_v24  ;;  %v3903_v13 = vsub.f32 %v3901_v25, %v3902_v19  ;;  %v3905_v33 = vsub.f32 %v3904_v3, %v3902_v19  ;;  %v3914_v60 = vld [vmem:[#allocation69_spill] sm:$0xff] }
 0x177   :  { %1311 = vst [vmem:[#allocation5 + $0x1d0] sm:$0xff] %v1215_v52  ;;  %1312 = vst [vmem:[#allocation5 + $0x1d8] sm:$0xff] %v1216_v35  ;;  %v1014_v48 = vmul.f32 %v1433_v45, %v3749_v26  ;;  %v1015_v53 = vmul.f32 %v1433_v45, %v2124_v11  ;;  %v1020_v22 = vmul.f32 %v1435_v55, %v3749_v26  ;;  %v1437_v38 = vpop.eup %1436  ;;  %v788_v35 = vadd.f32 1e-12, %v740_v44 }
 0x178   :  { %v1112_v40 = vmul.f32 %v1016_v14, %v3903_v13  ;;  %v1113_v36 = vmul.f32 %v1017_v28, %v3905_v33  ;;  %v1213_v18 = vadd.f32 %v2126_v9, %v1106_v27  ;;  %v1214_v4 = vadd.f32 %v2137_v10, %v1107_v50  ;;  %v3916_v14 = vld [vmem:[#allocation138_spill] sm:$0xff]  ;;  %v498_v27 = vpop.xlane.xlu1 %497  ;;  %v3920_v13 = vld [vmem:[#allocation71_spill] sm:$0xff] }
 0x179   :  { %v1021_v20 = vmul.f32 %v1435_v55, %v2124_v11  ;;  %v3908_v57 = vsub.f32 %v3906_v29, %v3907_v21  ;;  %v3910_v31 = vsub.f32 %v3909_v32, %v3907_v21  ;;  %v3913_v43 = vsub.f32 %v3911_v15, %v3912_v49  ;;  %v3918_v55 = vld [vmem:[#allocation125_spill] sm:$0xff]  ;;  %v3923_v29 = vld [vmem:[#allocation126_spill] sm:$0xff] }
 0x17a   :  { %v1219_v16 = vadd.f32 %v2126_v9, %v1112_v40  ;;  %v1220_v0 = vadd.f32 %v2137_v10, %v1113_v36  ;;  %1309 = vst [vmem:[#allocation5 + $0x1c0] sm:$0xff] %v1213_v18  ;;  %1310 = vst [vmem:[#allocation5 + $0x1c8] sm:$0xff] %v1214_v4  ;;  %v3915_v30 = vsub.f32 %v3914_v60, %v3912_v49  ;;  %v1439_v1 = vpop.eup %1438  ;;  %1442 = vrsqrt.f32 %v788_v35 }
 0x17b   :  { %v1110_v47 = vmul.f32 %v1014_v48, %v3908_v57  ;;  %v1111_v62 = vmul.f32 %v1015_v53, %v3910_v31  ;;  %v1116_v59 = vmul.f32 %v1020_v22, %v3913_v43  ;;  %v691_v28 = vsub.f32 %v2974_v5, %v3916_v14  ;;  %v3917_v5 = vld [vmem:[#allocation70_spill] sm:$0xff]  ;;  %v495_v48 = vpop.xlane.xlu0 %494 }
 0x17c   :  { %v1117_v52 = vmul.f32 %v1021_v20, %v3915_v30  ;;  %1315 = vst [vmem:[#allocation5 + $0x1f0] sm:$0xff] %v1219_v16  ;;  %1316 = vst [vmem:[#allocation5 + $0x1f8] sm:$0xff] %v1220_v0  ;;  %v1018_v63 = vmul.f32 %v1437_v38, %v3749_v26  ;;  %v1019_v23 = vmul.f32 %v1437_v38, %v2124_v11  ;;  %v598_v18 = vmul.f32 0.00390625, %v2980_v58  ;;  %v3922_v0 = vld [vmem:[#allocation72_spill] sm:$0xff] }
 0x17d   :  { %v1217_v45 = vadd.f32 %v2126_v9, %v1110_v47  ;;  %v1218_v37 = vadd.f32 %v2137_v10, %v1111_v62  ;;  %v1223_v24 = vadd.f32 %v2126_v9, %v1116_v59  ;;  %v739_v44 = vmax.f32 %v691_v28, 0.0  ;;  %v3925_v47 = vld [vmem:[#allocation73_spill] sm:$0xff]  ;;  %v504_v59 = vpop.xlane.xlu1 %503  ;;  %v3930_v28 = vld [vmem:[#allocation75_spill] sm:$0xff] }
 0x17e   :  { %v1224_v50 = vadd.f32 %v2137_v10, %v1117_v52  ;;  %v3919_v25 = vsub.f32 %v3917_v5, %v3918_v55  ;;  %v3921_v40 = vsub.f32 %v3920_v13, %v3918_v55  ;;  %v1024_v33 = vmul.f32 %v1439_v1, %v3749_v26 }
 0x17f   :  { %1313 = vst [vmem:[#allocation5 + $0x1e0] sm:$0xff] %v1217_v45  ;;  %1314 = vst [vmem:[#allocation5 + $0x1e8] sm:$0xff] %v1218_v37  ;;  %v1025_v36 = vmul.f32 %v1439_v1, %v2124_v11  ;;  %v787_v53 = vadd.f32 1e-12, %v739_v44  ;;  %v597_v4 = vmul.f32 0.00390625, %v2992_v54  ;;  %v600_v22 = vmul.f32 0.00390625, %v492_v12  ;;  %v1441_v62 = vpop.eup %1440  ;;  %v501_v1 = vpop.xlane.xlu0 %500 }
 0x180   :  { %v1114_v19 = vmul.f32 %v1018_v63, %v3919_v25  ;;  %v1115_v3 = vmul.f32 %v1019_v23, %v3921_v40  ;;  %1319 = vst [vmem:[#allocation5 + $0x210] sm:$0xff] %v1223_v24  ;;  %1320 = vst [vmem:[#allocation5 + $0x218] sm:$0xff] %v1224_v50  ;;  %v3924_v21 = vsub.f32 %v3922_v0, %v3923_v29  ;;  %v599_v35 = vmul.f32 0.00390625, %v489_v41 }
 0x181   :  { %v3926_v32 = vsub.f32 %v3925_v47, %v3923_v29  ;;  %1444 = vrsqrt.f32 %v787_v53  ;;  %v694_v38 = vsub.f32 %v598_v18, %v2590_v61  ;;  %v693_v58 = vsub.f32 %v597_v4, %v2600_v17  ;;  %v3927_v61 = vld [vmem:[#allocation74_spill] sm:$0xff]  ;;  %v3928_v17 = vld [vmem:[#allocation127_spill] sm:$0xff]  ;;  %v3933_v4 = vld [vmem:[#allocation129_spill] sm:$0xff] }
 0x182   :  { %v1221_v20 = vadd.f32 %v2126_v9, %v1114_v19  ;;  %v1222_v16 = vadd.f32 %v2137_v10, %v1115_v3  ;;  %v1120_v57 = vmul.f32 %v1024_v33, %v3924_v21  ;;  %v696_v54 = vsub.f32 %v600_v22, %v2613_v46 }
 0x183   :  { %v1121_v31 = vmul.f32 %v1025_v36, %v3926_v32  ;;  %v1022_v49 = vmul.f32 %v1441_v62, %v3749_v26  ;;  %v1023_v43 = vmul.f32 %v1441_v62, %v2124_v11  ;;  %v742_v60 = vmax.f32 %v694_v38, 0.0  ;;  %v507_v38 = vpop.xlane.xlu0 %506 }
 0x184   :  { %1317 = vst [vmem:[#allocation5 + $0x200] sm:$0xff] %v1221_v20  ;;  %1318 = vst [vmem:[#allocation5 + $0x208] sm:$0xff] %v1222_v16  ;;  %v1227_v12 = vadd.f32 %v2126_v9, %v1120_v57  ;;  %v741_v30 = vmax.f32 %v693_v58, 0.0  ;;  %v744_v52 = vmax.f32 %v696_v54, 0.0  ;;  %v3929_v46 = vsub.f32 %v3927_v61, %v3928_v17  ;;  %v1443_v13 = vpop.eup %1442  ;;  %v3935_v16 = vld [vmem:[#allocation77_spill] sm:$0xff] }
 0x185   :  { %v1228_v15 = vadd.f32 %v2137_v10, %v1121_v31  ;;  %v3931_v45 = vsub.f32 %v3930_v28, %v3928_v17  ;;  %v602_v63 = vmul.f32 0.00390625, %v498_v27  ;;  %v601_v23 = vmul.f32 0.00390625, %v495_v48  ;;  %v510_v48 = vpop.xlane.xlu1 %509 }
 0x186   :  { %1323 = vst [vmem:[#allocation5 + $0x230] sm:$0xff] %v1227_v12  ;;  %v1118_v14 = vmul.f32 %v1022_v49, %v3929_v46  ;;  %v790_v24 = vadd.f32 1e-12, %v742_v60  ;;  %v789_v50 = vadd.f32 1e-12, %v741_v30  ;;  %v695_v5 = vsub.f32 %v599_v35, %v2619_v42  ;;  %v3114_v46 = vld [vmem:[#allocation2 + $0x2a8] sm:$0xff] }
 0x187   :  { %1324 = vst [vmem:[#allocation5 + $0x238] sm:$0xff] %v1228_v15  ;;  %v1119_v37 = vmul.f32 %v1023_v43, %v3931_v45  ;;  %v792_v44 = vadd.f32 1e-12, %v744_v52  ;;  %v698_v25 = vsub.f32 %v602_v63, %v2632_v34  ;;  %v697_v19 = vsub.f32 %v601_v23, %v2652_v2  ;;  %v3932_v2 = vld [vmem:[#allocation76_spill] sm:$0xff]  ;;  %v3940_v52 = vld [vmem:[#allocation79_spill] sm:$0xff]  ;;  %v3118_v45 = vld [vmem:[#allocation2 + $0x2d0] sm:$0xff] }
 0x188   :  { %v1225_v41 = vadd.f32 %v2126_v9, %v1118_v14  ;;  %1446 = vrsqrt.f32 %v790_v24  ;;  %v743_v40 = vmax.f32 %v695_v5, 0.0  ;;  %v604_v3 = vmul.f32 0.00390625, %v504_v59  ;;  %v3938_v59 = vld [vmem:[#allocation131_spill] sm:$0xff]  ;;  %v3129_v5 = vld [vmem:[#allocation2 + $0x2c0] sm:$0xff] }
 0x189   :  { %v1226_v55 = vadd.f32 %v2137_v10, %v1119_v37  ;;  %v603_v27 = vmul.f32 0.00390625, %v501_v1  ;;  %v1028_v33 = vmul.f32 %v1443_v13, %v3749_v26  ;;  %v1029_v36 = vmul.f32 %v1443_v13, %v2124_v11  ;;  %v3133_v13 = vld [vmem:[#allocation2 + $0x2c8] sm:$0xff] }
 0x18a   :  { %1321 = vst [vmem:[#allocation5 + $0x220] sm:$0xff] %v1225_v41  ;;  %1448 = vrsqrt.f32 %v789_v50  ;;  %v746_v42 = vmax.f32 %v698_v25, 0.0  ;;  %v791_v53 = vadd.f32 1e-12, %v743_v40  ;;  %v745_v18 = vmax.f32 %v697_v19, 0.0  ;;  %v3125_v50 = vld [vmem:[#allocation2 + $0x2d8] sm:$0xff] }
 0x18b   :  { %1322 = vst [vmem:[#allocation5 + $0x228] sm:$0xff] %v1226_v55  ;;  %1450 = vrsqrt.f32 %v792_v44  ;;  %v700_v34 = vsub.f32 %v604_v3, %v2656_v6  ;;  %v3934_v22 = vsub.f32 %v3932_v2, %v3933_v4  ;;  %v3936_v0 = vsub.f32 %v3935_v16, %v3933_v4  ;;  %v1445_v47 = vpop.eup %1444  ;;  %v3942_v41 = vld [vmem:[#allocation141_spill] sm:$0xff]  ;;  %v3945_v2 = vld [vmem:[#allocation132_spill] sm:$0xff] }
 0x18c   :  { %v794_v21 = vadd.f32 1e-12, %v746_v42  ;;  %v699_v57 = vsub.f32 %v603_v27, %v2660_v39  ;;  %1452 = vrsqrt.f32 %v791_v53  ;;  %v793_v32 = vadd.f32 1e-12, %v745_v18  ;;  %v3937_v39 = vld [vmem:[#allocation78_spill] sm:$0xff] }
 0x18d   :  { %v1124_v20 = vmul.f32 %v1028_v33, %v3934_v22  ;;  %v1125_v29 = vmul.f32 %v1029_v36, %v3936_v0  ;;  %v748_v31 = vmax.f32 %v700_v34, 0.0  ;;  %v606_v62 = vmul.f32 0.00390625, %v510_v48  ;;  %v3139_v36 = vld [vmem:[#allocation2 + $0x2f0] sm:$0xff]  ;;  %v3944_v34 = vld [vmem:[#allocation80_spill] sm:$0xff] }
 0x18e   :  { %v1026_v54 = vmul.f32 %v1445_v47, %v3749_v26  ;;  %v1027_v12 = vmul.f32 %v1445_v47, %v2124_v11  ;;  %1454 = vrsqrt.f32 %v794_v21  ;;  %v747_v49 = vmax.f32 %v699_v57, 0.0  ;;  %v3943_v42 = vld [vmem:[#allocation142_spill] sm:$0xff]  ;;  %v3153_v47 = vld [vmem:[#allocation2 + $0x2f8] sm:$0xff] }
 0x18f   :  { %v1231_v58 = vadd.f32 %v2126_v9, %v1124_v20  ;;  %v1232_v6 = vadd.f32 %v2137_v10, %v1125_v29  ;;  %v796_v15 = vadd.f32 1e-12, %v748_v31  ;;  %v702_v43 = vsub.f32 %v606_v62, %v2665_v56  ;;  %v3947_v20 = vld [vmem:[#allocation81_spill] sm:$0xff]  ;;  %v3949_v31 = vld [vmem:[#allocation82_spill] sm:$0xff]  ;;  %v3950_v62 = vld [vmem:[#allocation135_spill] sm:$0xff] }
 0x190   :  { %v3939_v60 = vsub.f32 %v3937_v39, %v3938_v59  ;;  %v3941_v35 = vsub.f32 %v3940_v52, %v3938_v59  ;;  %1456 = vrsqrt.f32 %v793_v32  ;;  %v605_v17 = vmul.f32 0.00390625, %v507_v38  ;;  %v3954_v39 = vld [vmem:[#allocation84_spill] sm:$0xff]  ;;  %v3957_v52 = vld [vmem:[#allocation85_spill] sm:$0xff] }
 0x191   :  { %1327 = vst [vmem:[#allocation5 + $0x250] sm:$0xff] %v1231_v58  ;;  %1328 = vst [vmem:[#allocation5 + $0x258] sm:$0xff] %v1232_v6  ;;  %v932_v14 = vsub.f32 %v3114_v46, %v2624_v8  ;;  %1458 = vrsqrt.f32 %v796_v15  ;;  %v795_v28 = vadd.f32 1e-12, %v747_v49  ;;  %v750_v56 = vmax.f32 %v702_v43, 0.0  ;;  %v3952_v6 = vld [vmem:[#allocation83_spill] sm:$0xff] }
 0x192   :  { %v1122_v30 = vmul.f32 %v1026_v54, %v3939_v60  ;;  %v1123_v61 = vmul.f32 %v1027_v12, %v3941_v35  ;;  %v937_v37 = vsub.f32 %v3118_v45, %v2635_v7  ;;  %v701_v1 = vsub.f32 %v605_v17, %v2669_v51  ;;  %v1447_v24 = vpop.eup %1446  ;;  %v3955_v59 = vld [vmem:[#allocation136_spill] sm:$0xff] }
 0x193   :  { %v938_v44 = vsub.f32 %v3125_v50, %v2635_v7  ;;  %v935_v55 = vsub.f32 %v3129_v5, %v3942_v41  ;;  %1460 = vrsqrt.f32 %v795_v28  ;;  %v798_v25 = vadd.f32 1e-12, %v750_v56 }
 0x194   :  { %v1229_v63 = vadd.f32 %v2126_v9, %v1122_v30  ;;  %v1230_v23 = vadd.f32 %v2137_v10, %v1123_v61  ;;  %v1449_v19 = vpop.eup %1448  ;;  %v936_v40 = vsub.f32 %v3133_v13, %v3942_v41  ;;  %v1032_v51 = vmul.f32 %v1447_v24, %v3749_v26 }
 0x195   :  { %v1033_v3 = vmul.f32 %v1447_v24, %v2124_v11  ;;  %v749_v27 = vmax.f32 %v701_v1, 0.0  ;;  %v1451_v33 = vpop.eup %1450  ;;  %v941_v48 = vsub.f32 %v3139_v36, %v3943_v42  ;;  %v1030_v53 = vmul.f32 %v1449_v19, %v3749_v26  ;;  %v3971_v36 = vld [vmem:[#allocation143_spill] sm:$0xff] }
 0x196   :  { %1325 = vst [vmem:[#allocation5 + $0x240] sm:$0xff] %v1229_v63  ;;  %1326 = vst [vmem:[#allocation5 + $0x248] sm:$0xff] %v1230_v23  ;;  %v1031_v18 = vmul.f32 %v1449_v19, %v2124_v11  ;;  %1462 = vrsqrt.f32 %v798_v25  ;;  %v3946_v4 = vsub.f32 %v3944_v34, %v3945_v2  ;;  %v3948_v16 = vsub.f32 %v3947_v20, %v3945_v2  ;;  %v1453_v57 = vpop.eup %1452  ;;  %v3962_v34 = vld [vmem:[#allocation87_spill] sm:$0xff] }
 0x197   :  { %v1036_v29 = vmul.f32 %v1451_v33, %v3749_v26  ;;  %v1037_v21 = vmul.f32 %v1451_v33, %v2124_v11  ;;  %v942_v32 = vsub.f32 %v3153_v47, %v3943_v42  ;;  %v3951_v38 = vsub.f32 %v3949_v31, %v3950_v62  ;;  %v3960_v33 = vld [vmem:[#allocation139_spill] sm:$0xff] }
 0x198   :  { %v1128_v22 = vmul.f32 %v1032_v51, %v3946_v4  ;;  %v1129_v0 = vmul.f32 %v1033_v3, %v3948_v16  ;;  %v3953_v54 = vsub.f32 %v3952_v6, %v3950_v62  ;;  %v797_v15 = vadd.f32 1e-12, %v749_v27  ;;  %v1455_v17 = vpop.eup %1454  ;;  %v3959_v27 = vld [vmem:[#allocation86_spill] sm:$0xff]  ;;  %v3964_v16 = vld [vmem:[#allocation88_spill] sm:$0xff] }
 0x199   :  { %v1126_v58 = vmul.f32 %v1030_v53, %v3951_v38  ;;  %v3956_v60 = vsub.f32 %v3954_v39, %v3955_v59  ;;  %v3958_v35 = vsub.f32 %v3957_v52, %v3955_v59  ;;  %v1034_v63 = vmul.f32 %v1453_v57, %v3749_v26 }
 0x19a   :  { %v1127_v12 = vmul.f32 %v1031_v18, %v3953_v54  ;;  %v1235_v49 = vadd.f32 %v2126_v9, %v1128_v22  ;;  %v1236_v43 = vadd.f32 %v2137_v10, %v1129_v0  ;;  %v1035_v23 = vmul.f32 %v1453_v57, %v2124_v11  ;;  %v1457_v1 = vpop.eup %1456  ;;  %v3965_v0 = vld [vmem:[#allocation140_spill] sm:$0xff]  ;;  %v3967_v57 = vld [vmem:[#allocation89_spill] sm:$0xff] }
 0x19b   :  { %v1132_v30 = vmul.f32 %v1036_v29, %v3956_v60  ;;  %v1133_v61 = vmul.f32 %v1037_v21, %v3958_v35  ;;  %v1233_v28 = vadd.f32 %v2126_v9, %v1126_v58  ;;  %v1040_v19 = vmul.f32 %v1455_v17, %v3749_v26  ;;  %v1459_v3 = vpop.eup %1458 }
 0x19c   :  { %v1234_v56 = vadd.f32 %v2137_v10, %v1127_v12  ;;  %1331 = vst [vmem:[#allocation5 + $0x270] sm:$0xff] %v1235_v49  ;;  %1332 = vst [vmem:[#allocation5 + $0x278] sm:$0xff] %v1236_v43  ;;  %v1041_v51 = vmul.f32 %v1455_v17, %v2124_v11  ;;  %v3961_v53 = vsub.f32 %v3959_v27, %v3960_v33  ;;  %v3969_v49 = vld [vmem:[#allocation90_spill] sm:$0xff]  ;;  %1464 = vrsqrt.f32 %v797_v15  ;;  %v1474_v15 = vld [vmem:[#allocation2 + $0x2e8] sm:$0xff] }
 0x19d   :  { %v1239_v24 = vadd.f32 %v2126_v9, %v1132_v30  ;;  %v1240_v25 = vadd.f32 %v2137_v10, %v1133_v61  ;;  %1329 = vst [vmem:[#allocation5 + $0x260] sm:$0xff] %v1233_v28  ;;  %v3963_v2 = vsub.f32 %v3962_v34, %v3960_v33  ;;  %v1038_v22 = vmul.f32 %v1457_v1, %v3749_v26  ;;  %v1461_v6 = vpop.eup %1460 }
 0x19e   :  { %1330 = vst [vmem:[#allocation5 + $0x268] sm:$0xff] %v1234_v56  ;;  %v1130_v18 = vmul.f32 %v1034_v63, %v3961_v53  ;;  %v1039_v20 = vmul.f32 %v1457_v1, %v2124_v11  ;;  %v3966_v29 = vsub.f32 %v3964_v16, %v3965_v0  ;;  %v3968_v31 = vsub.f32 %v3967_v57, %v3965_v0 }
 0x19f   :  { %v1131_v4 = vmul.f32 %v1035_v23, %v3963_v2  ;;  %1335 = vst [vmem:[#allocation5 + $0x290] sm:$0xff] %v1239_v24  ;;  %1336 = vst [vmem:[#allocation5 + $0x298] sm:$0xff] %v1240_v25  ;;  %v1044_v38 = vmul.f32 %v1459_v3, %v3749_v26  ;;  %v1045_v58 = vmul.f32 %v1459_v3, %v2124_v11 }
 0x1a0   :  { %v1136_v21 = vmul.f32 %v1040_v19, %v3966_v29  ;;  %v1137_v62 = vmul.f32 %v1041_v51, %v3968_v31  ;;  %v1237_v54 = vadd.f32 %v2126_v9, %v1130_v18  ;;  %v3970_v43 = vsub.f32 %v3969_v49, %v2624_v8  ;;  %v1463_v61 = vpop.eup %1462 }
 0x1a1   :  { %v1238_v12 = vadd.f32 %v2137_v10, %v1131_v4  ;;  %v1135_v59 = vmul.f32 %v1039_v20, %v932_v14  ;;  %v1140_v52 = vmul.f32 %v1044_v38, %v937_v37  ;;  %v1141_v35 = vmul.f32 %v1045_v58, %v938_v44 }
 0x1a2   :  { %v1134_v39 = vmul.f32 %v1038_v22, %v3970_v43  ;;  %v1243_v60 = vadd.f32 %v2126_v9, %v1136_v21  ;;  %v1244_v30 = vadd.f32 %v2137_v10, %v1137_v62  ;;  %1333 = vst [vmem:[#allocation5 + $0x280] sm:$0xff] %v1237_v54  ;;  %v1042_v46 = vmul.f32 %v1461_v6, %v3749_v26 }
 0x1a3   :  { %1334 = vst [vmem:[#allocation5 + $0x288] sm:$0xff] %v1238_v12  ;;  %v1242_v8 = vadd.f32 %v2137_v10, %v1135_v59  ;;  %v1043_v14 = vmul.f32 %v1461_v6, %v2124_v11  ;;  %v1247_v45 = vadd.f32 %v2126_v9, %v1140_v52  ;;  %v1248_v37 = vadd.f32 %v2137_v10, %v1141_v35 }
 0x1a4   :  { %v1241_v17 = vadd.f32 %v2126_v9, %v1134_v39  ;;  %1339 = vst [vmem:[#allocation5 + $0x2b0] sm:$0xff] %v1243_v60  ;;  %1340 = vst [vmem:[#allocation5 + $0x2b8] sm:$0xff] %v1244_v30  ;;  %v1048_v7 = vmul.f32 %v1463_v61, %v3749_v26  ;;  %v1049_v50 = vmul.f32 %v1463_v61, %v2124_v11 }
 0x1a5   :  { %1338 = vst [vmem:[#allocation5 + $0x2a8] sm:$0xff] %v1242_v8  ;;  %v1138_v44 = vmul.f32 %v1042_v46, %v935_v55  ;;  %v1139_v28 = vmul.f32 %v1043_v14, %v936_v40  ;;  %1343 = vst [vmem:[#allocation5 + $0x2d0] sm:$0xff] %v1247_v45  ;;  %v1473_v40 = vld [vmem:[#allocation2 + $0x2e0] sm:$0xff]  ;;  %v940_v42 = vsub.f32 %v1474_v15, %v3971_v36 }
 0x1a6   :  { %1337 = vst [vmem:[#allocation5 + $0x2a0] sm:$0xff] %v1241_v17  ;;  %1344 = vst [vmem:[#allocation5 + $0x2d8] sm:$0xff] %v1248_v37  ;;  %v1144_v56 = vmul.f32 %v1048_v7, %v941_v48  ;;  %v1145_v63 = vmul.f32 %v1049_v50, %v942_v32  ;;  %v1465_v13 = vpop.eup %1464  ;;  %v939_v48 = vsub.f32 %v1473_v40, %v3971_v36 }
 0x1a7   :  { %v1245_v23 = vadd.f32 %v2126_v9, %v1138_v44  ;;  %v1246_v5 = vadd.f32 %v2137_v10, %v1139_v28  ;;  %v1046_v47 = vmul.f32 %v1465_v13, %v3749_v26  ;;  %v1047_v32 = vmul.f32 %v1465_v13, %v2124_v11 }
 0x1a8   :  { %v1251_v55 = vadd.f32 %v2126_v9, %v1144_v56  ;;  %v1252_v41 = vadd.f32 %v2137_v10, %v1145_v63 }
 0x1a9   :  { %1341 = vst [vmem:[#allocation5 + $0x2c0] sm:$0xff] %v1245_v23  ;;  %1342 = vst [vmem:[#allocation5 + $0x2c8] sm:$0xff] %v1246_v5  ;;  %v1142_v1 = vmul.f32 %v1046_v47, %v939_v48  ;;  %v1143_v24 = vmul.f32 %v1047_v32, %v940_v42 }
 0x1aa   :  { %1347 = vst [vmem:[#allocation5 + $0x2f0] sm:$0xff] %v1251_v55  ;;  %1348 = vst [vmem:[#allocation5 + $0x2f8] sm:$0xff] %v1252_v41 }
 0x1ab   :  { %v1249_v25 = vadd.f32 %v2126_v9, %v1142_v1  ;;  %v1250_v19 = vadd.f32 %v2137_v10, %v1143_v24 }
 0x1ad   :  { %1345 = vst [vmem:[#allocation5 + $0x2e0] sm:$0xff] %v1249_v25  ;;  %1346 = vst [vmem:[#allocation5 + $0x2e8] sm:$0xff] %v1250_v19 }
 0x1ae   :  { %1508 = shalt.err (!%p1505_p12)
}
 0x1af   :  { %s1509_s5 = scalar_lea.hbm %s3259_s3, 12288 }
 0x1b0   :  { %p1510_p13 = scmp.ne.s32.totalorder %s3259_s3, %s1509_s5  ;;  %p1513_p0 = scmp.lt.u32.totalorder %s1509_s5, %s3259_s3 }
 0x1b2   :  { %p1515_p1 = pnand %p1513_p0, %p1510_p13 }
 0x1b4   :  { %1518 = shalt.err (!%p1515_p1)
}
 0x1b5   :  { %1360 = dma.vmem_to_hbm [thread:$0]  %s1355_s2, 12288, %s3259_s3, [#allocation4], %s1524_s22, %s1524_s22, %s1525_s23  }
 0x1b6   :  { %1521 = dma.done.wait [#allocation4], 12288  }
 0x1b7   :  { %1522 = vsyncadd [#allocation4], 4294955008 }
 0x1b8   :  { %1364 = vsyncpa [#allocation3], 1 }
 0x1b9   :  { %1365 = vsyncpa [#allocation4], 1 }

</bundles_post_ra>
